<compile_context>
chip_gen: v5e
topology: v5e:2x2
jax: 0.10.0
libtpu: 0.0.40
codegen_flags: <defaults>
</compile_context>

<pallas_src>
import jax
import jax.numpy as jnp
from jax.experimental import pallas as pl
from jax.experimental.pallas import tpu as pltpu

STATE_DIM = 11
ACTION_DIM = 1
MSG_DIM = 32
MAX_CHILDREN = 2
H_UP = 64            # CriticUp hidden width
MLP_H1 = 400         # MLPBase hidden sizes
MLP_H2 = 300
EPS = 1e-12          # F.normalize eps

LANES = 128          # padded lane width
PAD_H1 = 512         # 400 -> 512 per head; both heads concatenated -> 1024
PAD_H2 = 384         # 300 -> 384

# In-kernel xum lane layout (a permutation of the torch concat order; the down layer-1 weight rows
# are permuted identically so the matmul is exact):
#   lanes  0-31 : msg_up   (torch xum[12:44])
#   lanes 32-43 : rel_pos  (torch xum[ 0:12])
#   lane     44 : action   (torch xum[44])
#   (msg_in, torch xum[45:77], is identically zero for the single-limb morphology and is dropped)


def _l2_normalize(x):
    # F.normalize: x / max(||x||, eps) == x * rsqrt(max(||x||^2, eps^2))  -> EUP rsqrt, no VPU divide
    s = jnp.sum(x * x, axis=-1, keepdims=True)
    return x * jax.lax.rsqrt(jnp.maximum(s, EPS * EPS))


# --------------------------------------------------------------------------------------- kernel
def fused_critic_kernel(x_ref,
                        w1_ref, b1_ref, w2_ref, b2_ref, w3_ref, b3_ref,
                        wq1_ref, bq1_ref, wq2_ref, bq2_ref, wq3_ref, bq3_ref,
                        out_ref):
    f32, bf16 = jnp.float32, jnp.bfloat16

    x_in = x_ref[...]                                          # bf16 (TB, 128) packed input row

    # ---------------- bottom-up (CriticUp) ----------------
    # W1 rows 32-44 are zero, so the rel_pos/action lanes of x_in do not perturb this matmul.
    xu = jnp.dot(x_in, w1_ref[...], preferred_element_type=f32) + b1_ref[...]
    xu = _l2_normalize(xu)                                     # padded lanes stay exactly zero
    # Single limb => no children => aggregated child message == 0, so
    # tanh(cat([xu, m])) @ W2 reduces to tanh(xu) @ W2[:64].
    h = jnp.tanh(xu).astype(bf16)
    h = jnp.tanh(jnp.dot(h, w2_ref[...], preferred_element_type=f32) + b2_ref[...])
    msg_up = jnp.dot(h.astype(bf16), w3_ref[...], preferred_element_type=f32) + b3_ref[...]
    msg_up = _l2_normalize(msg_up)                             # valid lanes 0-31, rest exactly 0

    # ---------------- assemble xum in-register (no HBM round trip) ----------------
    lane = jax.lax.broadcasted_iota(jnp.int32, (1, LANES), 1)
    x_rel = jnp.where(lane >= 32, x_in, jnp.zeros_like(x_in))  # keep rel_pos/action, drop state
    xum = msg_up.astype(bf16) + x_rel                          # disjoint lane ranges -> plain merge

    # ---------------- top-down (CriticDownAction): Q1 / Q2 ----------------
    h1 = jnp.dot(xum, wq1_ref[...], preferred_element_type=f32) + bq1_ref[...]
    h1 = jnp.maximum(h1, 0.0)                                  # (TB, 1024): head0 | head1
    hq0 = jnp.maximum(jnp.dot(h1[:, :PAD_H1].astype(bf16), wq2_ref[0],
                              preferred_element_type=f32) + bq2_ref[0], 0.0)
    hq1 = jnp.maximum(jnp.dot(h1[:, PAD_H1:].astype(bf16), wq2_ref[1],
                              preferred_element_type=f32) + bq2_ref[1], 0.0)
    hq = jnp.concatenate([hq0, hq1], axis=-1).astype(bf16)     # (TB, 768), lane-aligned halves
    # Fused head-3: rows 0:384 -> lane 0 (Q1), rows 384:768 -> lane 1 (Q2).
    out_ref[...] = jnp.dot(hq, wq3_ref[...], preferred_element_type=f32) + bq3_ref[...]
    # TODO(synk): CriticDownAction.msg_base / msg_down is not materialized — it does not
    # contribute to the tensors CriticGraphPolicy.forward returns.


# --------------------------------------------------------------------------------------- params
def _pad(x, shape, dtype=jnp.float32):
    out = jnp.zeros(shape, jnp.float32)
    idx = tuple(slice(0, s) for s in x.shape)
    return out.at[idx].set(x.astype(jnp.float32)).astype(dtype)


def _linear_init(key, fan_in, fan_out):
    kw, kb = jax.random.split(key)
    bound = fan_in ** -0.5
    w = jax.random.uniform(kw, (fan_in, fan_out), jnp.float32, -bound, bound)
    b = jax.random.uniform(kb, (fan_out,), jnp.float32, -bound, bound)
    return w, b


def init_params(key):
    ks = jax.random.split(key, 10)
    up = {
        "fc1": _linear_init(ks[0], STATE_DIM + ACTION_DIM, H_UP),
        "fc2": _linear_init(ks[1], H_UP + MSG_DIM, H_UP),
        "fc3": _linear_init(ks[2], H_UP, MSG_DIM),
        "att": _linear_init(ks[3], 9 + STATE_DIM, MSG_DIM),    # dead for a single limb
    }
    q_in = 12 + MSG_DIM + ACTION_DIM + MSG_DIM                 # 77
    down = []
    for qi in range(2):
        down.append({
            "l1": _linear_init(ks[4 + 3 * qi], q_in, MLP_H1),
            "l2": _linear_init(ks[5 + 3 * qi], MLP_H1, MLP_H2),
            "l3": _linear_init(ks[6 + 3 * qi], MLP_H2, 1),
        })
    return {"up": up, "down": down}


def pad_params(p):
    bf16 = jnp.bfloat16
    up = p["up"]
    w1, b1 = up["fc1"]; w2, b2 = up["fc2"]; w3, b3 = up["fc3"]
    W1 = _pad(w1, (LANES, LANES), bf16)            # merged [state rows 0-10 | action row 11]
    B1 = _pad(b1[None, :], (1, LANES))
    W2 = _pad(w2[:H_UP], (LANES, LANES), bf16)     # xu part only; child-message part is dead
    B2 = _pad(b2[None, :], (1, LANES))
    W3 = _pad(w3, (LANES, LANES), bf16)
    B3 = _pad(b3[None, :], (1, LANES))

    # Fused + lane-permuted layer 1 of both Q heads: (128, 1024), head q in columns [q*512, q*512+400)
    wq1 = jnp.zeros((LANES, 2 * PAD_H1), jnp.float32)
    bq1 = jnp.zeros((1, 2 * PAD_H1), jnp.float32)
    for q in range(2):
        wl1, bl1 = p["down"][q]["l1"]              # (77, 400), (400,)
        c = q * PAD_H1
        wq1 = wq1.at[0:32, c:c + MLP_H1].set(wl1[12:44])      # msg_up rows
        wq1 = wq1.at[32:44, c:c + MLP_H1].set(wl1[0:12])      # rel_pos rows
        wq1 = wq1.at[44:45, c:c + MLP_H1].set(wl1[44:45])     # action row
        # rows 45:77 (msg_in) multiply an identically-zero message and are dropped
        bq1 = bq1.at[0, c:c + MLP_H1].set(bl1)
    wq1 = wq1.astype(bf16)

    wq2 = jnp.stack([_pad(p["down"][q]["l2"][0], (PAD_H1, PAD_H2), bf16) for q in range(2)])
    bq2 = jnp.stack([_pad(p["down"][q]["l2"][1][None, :], (1, PAD_H2)) for q in range(2)])

    # Fused layer 3: (768, 128); head q's 300 valid rows live at [q*384, q*384+300), column q.
    wq3 = jnp.zeros((2 * PAD_H2, LANES), jnp.float32)
    bq3 = jnp.zeros((1, LANES), jnp.float32)
    for q in range(2):
        wq3 = wq3.at[q * PAD_H2:q * PAD_H2 + MLP_H2, q:q + 1].set(p["down"][q]["l3"][0])
        bq3 = bq3.at[0, q].set(p["down"][q]["l3"][1][0])
    wq3 = wq3.astype(bf16)

    return (W1, B1, W2, B2, W3, B3, wq1, bq1, wq2, bq2, wq3, bq3)


# --------------------------------------------------------------------------------------- wrapper
def _pick_tb(b):
    """Batch tile: big enough for MXU M-occupancy, >= 2 grid steps when possible (v7x dual-TC)."""
    bp8 = pl.cdiv(b, 8) * 8
    if bp8 >= 512:
        return 256
    if bp8 >= 256:
        return 128
    if bp8 <= 8:
        return 8
    return min(128, pl.cdiv(pl.cdiv(bp8, 2), 8) * 8)


def critic_graph_forward(state, action, padded):
    """CriticGraphPolicy.forward for the single-limb morphology (parents=[-1])."""
    b = state.shape[0]
    tb = _pick_tb(b)
    bp = pl.cdiv(b, tb) * tb

    act = action[:, 0:1]                            # input_action[0] = unsqueeze(action[:, 0], -1)
    # rel_pos for the root limb: parents=[-1] wraps to the limb itself -> relative position is 0.
    cur_pos = state[:, :3]
    rel = cur_pos - cur_pos
    rel_pos = jnp.concatenate([jnp.abs(rel), rel, cur_pos, cur_pos], axis=-1)     # (B, 12)

    # One packed bf16 input row per batch element (concat + pad; no .at[].set scatters):
    #   lanes 0-10 state | 11 action | 12-31 zero | 32-43 rel_pos | 44 action | 45-127 zero
    x_row = jnp.concatenate([
        state, act,
        jnp.zeros((b, 32 - (STATE_DIM + 1)), jnp.float32),
        rel_pos, act,
        jnp.zeros((b, LANES - 45), jnp.float32),
    ], axis=-1).astype(jnp.bfloat16)
    x_in = jnp.pad(x_row, ((0, bp - b), (0, 0)))

    batch_spec = pl.BlockSpec((tb, LANES), lambda i: (i, 0))

    def resident(shape):                            # weights stay VMEM-resident across batch tiles
        zeros = (0,) * len(shape)
        return pl.BlockSpec(shape, lambda i: zeros)

    w_shapes = [(LANES, LANES), (1, LANES), (LANES, LANES), (1, LANES),
                (LANES, LANES), (1, LANES),
                (LANES, 2 * PAD_H1), (1, 2 * PAD_H1),
                (2, PAD_H1, PAD_H2), (2, 1, PAD_H2),
                (2 * PAD_H2, LANES), (1, LANES)]
    in_specs = [batch_spec] + [resident(s) for s in w_shapes]

    out = pl.pallas_call(
        fused_critic_kernel,
        out_shape=jax.ShapeDtypeStruct((bp, LANES), jnp.float32),
        grid=(bp // tb,),
        in_specs=in_specs,
        out_specs=batch_spec,
        compiler_params=pltpu.CompilerParams(dimension_semantics=("parallel",)),
    )(x_in, *padded)

    # torch.stack over limbs then sum(dim=-1); num_limbs == 1 -> identity on (B, 1).
    return out[:b, 0:1], out[:b, 1:2]


# --------------------------------------------------------------------------------------- reference
def reference_forward(state, action, params):
    up = params["up"]
    b = state.shape[0]
    u = action[:, 0:1]
    w1, b1 = up["fc1"]; w2, b2 = up["fc2"]; w3, b3 = up["fc3"]; wa, ba = up["att"]
    xu = jnp.concatenate([state, u], -1) @ w1 + b1
    xu = xu / jnp.maximum(jnp.linalg.norm(xu, axis=-1, keepdims=True), EPS)
    cs = jnp.zeros((b, MAX_CHILDREN, 9 + STATE_DIM), jnp.float32)
    att = jax.nn.softmax(cs @ wa + ba, axis=-2)
    m = jnp.zeros((b, MAX_CHILDREN, MSG_DIM), jnp.float32)
    m = (m * att).sum(axis=-2)
    h = jnp.tanh(jnp.concatenate([xu, m], -1))
    h = jnp.tanh(h @ w2 + b2)
    msg_up = h @ w3 + b3
    msg_up = msg_up / jnp.maximum(jnp.linalg.norm(msg_up, axis=-1, keepdims=True), EPS)
    cur_pos = state[:, :3]
    rel = cur_pos - cur_pos
    rel_pos = jnp.concatenate([jnp.abs(rel), rel, cur_pos, cur_pos], -1)
    msg_in = jnp.zeros((b, MSG_DIM), jnp.float32)
    xum = jnp.concatenate([rel_pos, msg_up, u, msg_in], -1)
    outs = []
    for qi in range(2):
        d = params["down"][qi]
        hh = jax.nn.relu(xum @ d["l1"][0] + d["l1"][1])
        hh = jax.nn.relu(hh @ d["l2"][0] + d["l2"][1])
        outs.append(hh @ d["l3"][0] + d["l3"][1])
    return outs[0], outs[1]


if __name__ == "__main__":
    key = jax.random.PRNGKey(0)
    k_state, k_act, k_par = jax.random.split(key, 3)
    batch = 16
    state = jax.random.normal(k_state, (batch, STATE_DIM), jnp.float32)   # (B, state_dim * num_limbs)
    action = jax.random.normal(k_act, (batch, ACTION_DIM), jnp.float32)   # (B, num_limbs)
    params = init_params(k_par)
    padded = pad_params(params)

    fwd = jax.jit(critic_graph_forward)
    x1, x2 = fwd(state, action, padded)
    jax.block_until_ready((x1, x2))

    r1, r2 = reference_forward(state, action, params)
    assert x1.shape == (batch, 1) and x2.shape == (batch, 1)
    # bf16 weights + bf16 inputs/activations (f32 accumulation) -> looser tolerance than pure f32.
    assert jnp.allclose(x1, r1, atol=3e-2, rtol=3e-2), float(jnp.max(jnp.abs(x1 - r1)))
    assert jnp.allclose(x2, r2, atol=3e-2, rtol=3e-2), float(jnp.max(jnp.abs(x2 - r2)))
    print("KERNEL_OK")
</pallas_src>

<mosaic_0001>
module attributes {stable_mosaic.version = 11 : i64} {
  func.func @fused_critic_kernel(%arg0: i32, %arg1: memref<8x128xbf16, #tpu.memory_space<vmem>>, %arg2: memref<128x128xbf16, #tpu.memory_space<vmem>>, %arg3: memref<1x128xf32, #tpu.memory_space<vmem>>, %arg4: memref<128x128xbf16, #tpu.memory_space<vmem>>, %arg5: memref<1x128xf32, #tpu.memory_space<vmem>>, %arg6: memref<128x128xbf16, #tpu.memory_space<vmem>>, %arg7: memref<1x128xf32, #tpu.memory_space<vmem>>, %arg8: memref<128x1024xbf16, #tpu.memory_space<vmem>>, %arg9: memref<1x1024xf32, #tpu.memory_space<vmem>>, %arg10: memref<2x512x384xbf16, #tpu.memory_space<vmem>>, %arg11: memref<2x1x384xf32, #tpu.memory_space<vmem>>, %arg12: memref<768x128xbf16, #tpu.memory_space<vmem>>, %arg13: memref<1x128xf32, #tpu.memory_space<vmem>>, %arg14: memref<8x128xf32, #tpu.memory_space<vmem>>) attributes {dimension_semantics = [#tpu.dimension_semantics<parallel>], iteration_bounds = array<i64: 2>, scalar_prefetch = 0 : i64, scratch_operands = 0 : i64, tpu.core_type = #tpu.core_type<tc>, window_params = [{transform_indices = @transform_0, window_bounds = array<i64: 8, 128>}, {pipeline_mode = #tpu.pipeline_mode<synchronous>, transform_indices = @transform_1, window_bounds = array<i64: 128, 128>}, {pipeline_mode = #tpu.pipeline_mode<synchronous>, transform_indices = @transform_2, window_bounds = array<i64: 1, 128>}, {pipeline_mode = #tpu.pipeline_mode<synchronous>, transform_indices = @transform_3, window_bounds = array<i64: 128, 128>}, {pipeline_mode = #tpu.pipeline_mode<synchronous>, transform_indices = @transform_4, window_bounds = array<i64: 1, 128>}, {pipeline_mode = #tpu.pipeline_mode<synchronous>, transform_indices = @transform_5, window_bounds = array<i64: 128, 128>}, {pipeline_mode = #tpu.pipeline_mode<synchronous>, transform_indices = @transform_6, window_bounds = array<i64: 1, 128>}, {pipeline_mode = #tpu.pipeline_mode<synchronous>, transform_indices = @transform_7, window_bounds = array<i64: 128, 1024>}, {pipeline_mode = #tpu.pipeline_mode<synchronous>, transform_indices = @transform_8, window_bounds = array<i64: 1, 1024>}, {pipeline_mode = #tpu.pipeline_mode<synchronous>, transform_indices = @transform_9, window_bounds = array<i64: 2, 512, 384>}, {pipeline_mode = #tpu.pipeline_mode<synchronous>, transform_indices = @transform_10, window_bounds = array<i64: 2, 1, 384>}, {pipeline_mode = #tpu.pipeline_mode<synchronous>, transform_indices = @transform_11, window_bounds = array<i64: 768, 128>}, {pipeline_mode = #tpu.pipeline_mode<synchronous>, transform_indices = @transform_12, window_bounds = array<i64: 1, 128>}, {transform_indices = @transform_13, window_bounds = array<i64: 8, 128>}]} {
    %c0 = arith.constant 0 : index
    %c0_0 = arith.constant 0 : index
    %0 = vector.load %arg1[%c0, %c0_0] : memref<8x128xbf16, #tpu.memory_space<vmem>>, vector<8x128xbf16>
    %c0_1 = arith.constant 0 : index
    %c0_2 = arith.constant 0 : index
    %1 = vector.load %arg2[%c0_1, %c0_2] : memref<128x128xbf16, #tpu.memory_space<vmem>>, vector<128x128xbf16>
    %cst = arith.constant dense<0.000000e+00> : vector<8x128xf32>
    %2 = tpu.matmul %0, %1, %cst {dimension_numbers = #tpu.dot_dimension_numbers<[1], [0], [0], [1], [0, 0, 1, 1], [], []>} : vector<8x128xbf16>, vector<128x128xbf16>, vector<8x128xf32> -> vector<8x128xf32>
    %c0_3 = arith.constant 0 : index
    %c0_4 = arith.constant 0 : index
    %3 = vector.load %arg3[%c0_3, %c0_4] : memref<1x128xf32, #tpu.memory_space<vmem>>, vector<1x128xf32>
    %4 = vector.broadcast %3 : vector<1x128xf32> to vector<8x128xf32>
    %5 = arith.addf %2, %4 : vector<8x128xf32>
    %6 = arith.mulf %5, %5 : vector<8x128xf32>
    %cst_5 = arith.constant dense<0.000000e+00> : vector<8xf32>
    %7 = vector.multi_reduction <add>, %6, %cst_5 [1] : vector<8x128xf32> to vector<8xf32>
    %8 = vector.shape_cast %7 : vector<8xf32> to vector<8x1xf32>
    %cst_6 = arith.constant 1.000000e-24 : f32
    %9 = vector.broadcast %cst_6 : f32 to vector<8x1xf32>
    %10 = arith.maximumf %8, %9 : vector<8x1xf32>
    %11 = math.rsqrt %10 : vector<8x1xf32>
    %12 = vector.broadcast %11 : vector<8x1xf32> to vector<8x128xf32>
    %13 = arith.mulf %5, %12 : vector<8x128xf32>
    %14 = math.tanh %13 : vector<8x128xf32>
    %15 = arith.truncf %14 : vector<8x128xf32> to vector<8x128xbf16>
    %c0_7 = arith.constant 0 : index
    %c0_8 = arith.constant 0 : index
    %16 = vector.load %arg4[%c0_7, %c0_8] : memref<128x128xbf16, #tpu.memory_space<vmem>>, vector<128x128xbf16>
    %cst_9 = arith.constant dense<0.000000e+00> : vector<8x128xf32>
    %17 = tpu.matmul %15, %16, %cst_9 {dimension_numbers = #tpu.dot_dimension_numbers<[1], [0], [0], [1], [0, 0, 1, 1], [], []>} : vector<8x128xbf16>, vector<128x128xbf16>, vector<8x128xf32> -> vector<8x128xf32>
    %c0_10 = arith.constant 0 : index
    %c0_11 = arith.constant 0 : index
    %18 = vector.load %arg5[%c0_10, %c0_11] : memref<1x128xf32, #tpu.memory_space<vmem>>, vector<1x128xf32>
    %19 = vector.broadcast %18 : vector<1x128xf32> to vector<8x128xf32>
    %20 = arith.addf %17, %19 : vector<8x128xf32>
    %21 = math.tanh %20 : vector<8x128xf32>
    %22 = arith.truncf %21 : vector<8x128xf32> to vector<8x128xbf16>
    %c0_12 = arith.constant 0 : index
    %c0_13 = arith.constant 0 : index
    %23 = vector.load %arg6[%c0_12, %c0_13] : memref<128x128xbf16, #tpu.memory_space<vmem>>, vector<128x128xbf16>
    %cst_14 = arith.constant dense<0.000000e+00> : vector<8x128xf32>
    %24 = tpu.matmul %22, %23, %cst_14 {dimension_numbers = #tpu.dot_dimension_numbers<[1], [0], [0], [1], [0, 0, 1, 1], [], []>} : vector<8x128xbf16>, vector<128x128xbf16>, vector<8x128xf32> -> vector<8x128xf32>
    %c0_15 = arith.constant 0 : index
    %c0_16 = arith.constant 0 : index
    %25 = vector.load %arg7[%c0_15, %c0_16] : memref<1x128xf32, #tpu.memory_space<vmem>>, vector<1x128xf32>
    %26 = vector.broadcast %25 : vector<1x128xf32> to vector<8x128xf32>
    %27 = arith.addf %24, %26 : vector<8x128xf32>
    %28 = arith.mulf %27, %27 : vector<8x128xf32>
    %cst_17 = arith.constant dense<0.000000e+00> : vector<8xf32>
    %29 = vector.multi_reduction <add>, %28, %cst_17 [1] : vector<8x128xf32> to vector<8xf32>
    %30 = vector.shape_cast %29 : vector<8xf32> to vector<8x1xf32>
    %cst_18 = arith.constant 1.000000e-24 : f32
    %31 = vector.broadcast %cst_18 : f32 to vector<8x1xf32>
    %32 = arith.maximumf %30, %31 : vector<8x1xf32>
    %33 = math.rsqrt %32 : vector<8x1xf32>
    %34 = vector.broadcast %33 : vector<8x1xf32> to vector<8x128xf32>
    %35 = arith.mulf %27, %34 : vector<8x128xf32>
    %36 = tpu.iota {dimensions = array<i32: 1>} : vector<1x128xi32>
    %c32_i32 = arith.constant 32 : i32
    %37 = vector.broadcast %c32_i32 : i32 to vector<1x128xi32>
    %38 = arith.cmpi sge, %36, %37 : vector<1x128xi32>
    %cst_19 = arith.constant 0.000000e+00 : bf16
    %39 = vector.broadcast %cst_19 : bf16 to vector<8x128xbf16>
    %40 = vector.shape_cast %38 : vector<1x128xi1> to vector<1x128xi1>
    %41 = vector.broadcast %40 : vector<1x128xi1> to vector<8x128xi1>
    %42 = arith.select %41, %0, %39 : vector<8x128xi1>, vector<8x128xbf16>
    %43 = arith.truncf %35 : vector<8x128xf32> to vector<8x128xbf16>
    %44 = arith.addf %43, %42 : vector<8x128xbf16>
    %c0_20 = arith.constant 0 : index
    %c0_21 = arith.constant 0 : index
    %45 = vector.load %arg8[%c0_20, %c0_21] : memref<128x1024xbf16, #tpu.memory_space<vmem>>, vector<128x1024xbf16>
    %cst_22 = arith.constant dense<0.000000e+00> : vector<8x1024xf32>
    %46 = tpu.matmul %44, %45, %cst_22 {dimension_numbers = #tpu.dot_dimension_numbers<[1], [0], [0], [1], [0, 0, 1, 1], [], []>} : vector<8x128xbf16>, vector<128x1024xbf16>, vector<8x1024xf32> -> vector<8x1024xf32>
    %c0_23 = arith.constant 0 : index
    %c0_24 = arith.constant 0 : index
    %47 = vector.load %arg9[%c0_23, %c0_24] : memref<1x1024xf32, #tpu.memory_space<vmem>>, vector<1x1024xf32>
    %48 = vector.broadcast %47 : vector<1x1024xf32> to vector<8x1024xf32>
    %49 = arith.addf %46, %48 : vector<8x1024xf32>
    %cst_25 = arith.constant 0.000000e+00 : f32
    %50 = vector.broadcast %cst_25 : f32 to vector<8x1024xf32>
    %51 = arith.maximumf %49, %50 : vector<8x1024xf32>
    %52 = vector.extract_strided_slice %51 {offsets = [0, 0], sizes = [8, 512], strides = [1, 1]} : vector<8x1024xf32> to vector<8x512xf32>
    %53 = arith.truncf %52 : vector<8x512xf32> to vector<8x512xbf16>
    %c0_26 = arith.constant 0 : index
    %c0_27 = arith.constant 0 : index
    %c0_28 = arith.constant 0 : index
    %54 = vector.load %arg10[%c0_26, %c0_27, %c0_28] : memref<2x512x384xbf16, #tpu.memory_space<vmem>>, vector<1x512x384xbf16>
    %55 = vector.shape_cast %54 : vector<1x512x384xbf16> to vector<512x384xbf16>
    %cst_29 = arith.constant dense<0.000000e+00> : vector<8x384xf32>
    %56 = tpu.matmul %53, %55, %cst_29 {dimension_numbers = #tpu.dot_dimension_numbers<[1], [0], [0], [1], [0, 0, 1, 1], [], []>} : vector<8x512xbf16>, vector<512x384xbf16>, vector<8x384xf32> -> vector<8x384xf32>
    %c0_30 = arith.constant 0 : index
    %c0_31 = arith.constant 0 : index
    %c0_32 = arith.constant 0 : index
    %57 = vector.load %arg11[%c0_30, %c0_31, %c0_32] : memref<2x1x384xf32, #tpu.memory_space<vmem>>, vector<1x1x384xf32>
    %58 = vector.shape_cast %57 : vector<1x1x384xf32> to vector<1x384xf32>
    %59 = vector.broadcast %58 : vector<1x384xf32> to vector<8x384xf32>
    %60 = arith.addf %56, %59 : vector<8x384xf32>
    %cst_33 = arith.constant 0.000000e+00 : f32
    %61 = vector.broadcast %cst_33 : f32 to vector<8x384xf32>
    %62 = arith.maximumf %60, %61 : vector<8x384xf32>
    %63 = vector.extract_strided_slice %51 {offsets = [0, 512], sizes = [8, 512], strides = [1, 1]} : vector<8x1024xf32> to vector<8x512xf32>
    %64 = arith.truncf %63 : vector<8x512xf32> to vector<8x512xbf16>
    %c1 = arith.constant 1 : index
    %c0_34 = arith.constant 0 : index
    %c0_35 = arith.constant 0 : index
    %65 = vector.load %arg10[%c1, %c0_34, %c0_35] : memref<2x512x384xbf16, #tpu.memory_space<vmem>>, vector<1x512x384xbf16>
    %66 = vector.shape_cast %65 : vector<1x512x384xbf16> to vector<512x384xbf16>
    %cst_36 = arith.constant dense<0.000000e+00> : vector<8x384xf32>
    %67 = tpu.matmul %64, %66, %cst_36 {dimension_numbers = #tpu.dot_dimension_numbers<[1], [0], [0], [1], [0, 0, 1, 1], [], []>} : vector<8x512xbf16>, vector<512x384xbf16>, vector<8x384xf32> -> vector<8x384xf32>
    %c1_37 = arith.constant 1 : index
    %c0_38 = arith.constant 0 : index
    %c0_39 = arith.constant 0 : index
    %68 = vector.load %arg11[%c1_37, %c0_38, %c0_39] : memref<2x1x384xf32, #tpu.memory_space<vmem>>, vector<1x1x384xf32>
    %69 = vector.shape_cast %68 : vector<1x1x384xf32> to vector<1x384xf32>
    %70 = vector.broadcast %69 : vector<1x384xf32> to vector<8x384xf32>
    %71 = arith.addf %67, %70 : vector<8x384xf32>
    %cst_40 = arith.constant 0.000000e+00 : f32
    %72 = vector.broadcast %cst_40 : f32 to vector<8x384xf32>
    %73 = arith.maximumf %71, %72 : vector<8x384xf32>
    %74 = tpu.concatenate %62, %73 in 1 : vector<8x384xf32>, vector<8x384xf32> -> vector<8x768xf32>
    %75 = arith.truncf %74 : vector<8x768xf32> to vector<8x768xbf16>
    %c0_41 = arith.constant 0 : index
    %c0_42 = arith.constant 0 : index
    %76 = vector.load %arg12[%c0_41, %c0_42] : memref<768x128xbf16, #tpu.memory_space<vmem>>, vector<768x128xbf16>
    %cst_43 = arith.constant dense<0.000000e+00> : vector<8x128xf32>
    %77 = tpu.matmul %75, %76, %cst_43 {dimension_numbers = #tpu.dot_dimension_numbers<[1], [0], [0], [1], [0, 0, 1, 1], [], []>} : vector<8x768xbf16>, vector<768x128xbf16>, vector<8x128xf32> -> vector<8x128xf32>
    %c0_44 = arith.constant 0 : index
    %c0_45 = arith.constant 0 : index
    %78 = vector.load %arg13[%c0_44, %c0_45] : memref<1x128xf32, #tpu.memory_space<vmem>>, vector<1x128xf32>
    %79 = vector.broadcast %78 : vector<1x128xf32> to vector<8x128xf32>
    %80 = arith.addf %77, %79 : vector<8x128xf32>
    %c0_46 = arith.constant 0 : index
    %c0_47 = arith.constant 0 : index
    %81 = vector.load %arg14[%c0_46, %c0_47] : memref<8x128xf32, #tpu.memory_space<vmem>>, vector<8x128xf32>
    tpu.vector_store %arg14[%c0_46, %c0_47], %80 {strides = array<i32>} : memref<8x128xf32, #tpu.memory_space<vmem>>, vector<8x128xf32>,
    return
  }
  func.func @transform_0(%arg0: i32) -> (i32, i32) {
    %c0_i32 = arith.constant 0 : i32
    %c0_i32_0 = arith.constant 0 : i32
    return %arg0, %c0_i32 : i32, i32
  }
  func.func @transform_1(%arg0: i32) -> (i32, i32) {
    %c0_i32 = arith.constant 0 : i32
    %c0_i32_0 = arith.constant 0 : i32
    %c0_i32_1 = arith.constant 0 : i32
    return %c0_i32, %c0_i32_0 : i32, i32
  }
  func.func @transform_2(%arg0: i32) -> (i32, i32) {
    %c0_i32 = arith.constant 0 : i32
    %c0_i32_0 = arith.constant 0 : i32
    %c0_i32_1 = arith.constant 0 : i32
    return %c0_i32, %c0_i32_0 : i32, i32
  }
  func.func @transform_3(%arg0: i32) -> (i32, i32) {
    %c0_i32 = arith.constant 0 : i32
    %c0_i32_0 = arith.constant 0 : i32
    %c0_i32_1 = arith.constant 0 : i32
    return %c0_i32, %c0_i32_0 : i32, i32
  }
  func.func @transform_4(%arg0: i32) -> (i32, i32) {
    %c0_i32 = arith.constant 0 : i32
    %c0_i32_0 = arith.constant 0 : i32
    %c0_i32_1 = arith.constant 0 : i32
    return %c0_i32, %c0_i32_0 : i32, i32
  }
  func.func @transform_5(%arg0: i32) -> (i32, i32) {
    %c0_i32 = arith.constant 0 : i32
    %c0_i32_0 = arith.constant 0 : i32
    %c0_i32_1 = arith.constant 0 : i32
    return %c0_i32, %c0_i32_0 : i32, i32
  }
  func.func @transform_6(%arg0: i32) -> (i32, i32) {
    %c0_i32 = arith.constant 0 : i32
    %c0_i32_0 = arith.constant 0 : i32
    %c0_i32_1 = arith.constant 0 : i32
    return %c0_i32, %c0_i32_0 : i32, i32
  }
  func.func @transform_7(%arg0: i32) -> (i32, i32) {
    %c0_i32 = arith.constant 0 : i32
    %c0_i32_0 = arith.constant 0 : i32
    %c0_i32_1 = arith.constant 0 : i32
    return %c0_i32, %c0_i32_0 : i32, i32
  }
  func.func @transform_8(%arg0: i32) -> (i32, i32) {
    %c0_i32 = arith.constant 0 : i32
    %c0_i32_0 = arith.constant 0 : i32
    %c0_i32_1 = arith.constant 0 : i32
    return %c0_i32, %c0_i32_0 : i32, i32
  }
  func.func @transform_9(%arg0: i32) -> (i32, i32, i32) {
    %c0_i32 = arith.constant 0 : i32
    %c0_i32_0 = arith.constant 0 : i32
    %c0_i32_1 = arith.constant 0 : i32
    %c0_i32_2 = arith.constant 0 : i32
    return %c0_i32, %c0_i32_0, %c0_i32_1 : i32, i32, i32
  }
  func.func @transform_10(%arg0: i32) -> (i32, i32, i32) {
    %c0_i32 = arith.constant 0 : i32
    %c0_i32_0 = arith.constant 0 : i32
    %c0_i32_1 = arith.constant 0 : i32
    %c0_i32_2 = arith.constant 0 : i32
    return %c0_i32, %c0_i32_0, %c0_i32_1 : i32, i32, i32
  }
  func.func @transform_11(%arg0: i32) -> (i32, i32) {
    %c0_i32 = arith.constant 0 : i32
    %c0_i32_0 = arith.constant 0 : i32
    %c0_i32_1 = arith.constant 0 : i32
    return %c0_i32, %c0_i32_0 : i32, i32
  }
  func.func @transform_12(%arg0: i32) -> (i32, i32) {
    %c0_i32 = arith.constant 0 : i32
    %c0_i32_0 = arith.constant 0 : i32
    %c0_i32_1 = arith.constant 0 : i32
    return %c0_i32, %c0_i32_0 : i32, i32
  }
  func.func @transform_13(%arg0: i32) -> (i32, i32) {
    %c0_i32 = arith.constant 0 : i32
    %c0_i32_0 = arith.constant 0 : i32
    return %arg0, %c0_i32 : i32, i32
  }
}

</mosaic_0001>

<bundles_post_ra>
// kernel: critic_graph_forward.1
= control target key start
LH: loop header
LB: loop body
LE: loop exit
PB: predicated region body
PF: predicated region fallthrough
CT: control target
= control target key end

     0   :  { %s5676_s0 = inlined_call_operand.vmem [shape: bf16[16,128], index: 0, kind: input, shape index: {}]   ;;  %s5677_s1 = inlined_call_operand.vmem [shape: bf16[128,128], index: 1, kind: input, shape index: {}]   ;;  %s5678_s2 = inlined_call_operand.vmem [shape: f32[1,128], index: 2, kind: input, shape index: {}]   ;;  %s5679_s3 = inlined_call_operand.vmem [shape: bf16[128,128], index: 3, kind: input, shape index: {}]   ;;  %s5680_s4 = inlined_call_operand.vmem [shape: f32[1,128], index: 4, kind: input, shape index: {}]   ;;  %s5681_s5 = inlined_call_operand.hbm [shape: bf16[128,128], index: 5, kind: input, shape index: {}]   ;;  %s5682_s6 = inlined_call_operand.vmem [shape: f32[1,128], index: 6, kind: input, shape index: {}]   ;;  %s5683_s7 = inlined_call_operand.hbm [shape: bf16[128,1024], index: 7, kind: input, shape index: {}]   ;;  %s5684_s8 = inlined_call_operand.vmem [shape: f32[1,1024], index: 8, kind: input, shape index: {}]   ;;  %s5685_s9 = inlined_call_operand.hbm [shape: bf16[2,512,384], index: 9, kind: input, shape index: {}]   ;;  %s5686_s10 = inlined_call_operand.vmem [shape: f32[2,1,384], index: 10, kind: input, shape index: {}]   ;;  %s5687_s11 = inlined_call_operand.hbm [shape: bf16[768,128], index: 11, kind: input, shape index: {}]   ;;  %s5688_s12 = inlined_call_operand.vmem [shape: f32[1,128], index: 12, kind: input, shape index: {}]   ;;  %s5689_s13 = inlined_call_operand.vmem [shape: f32[16,128], index: 13, kind: output, shape index: {}]  }
   0x1   :  { %5691 = sst [smem:[#allocation13_spill]] %s5681_s5 }
   0x2   :  { %5692 = sst [smem:[#allocation14_spill]] %s5683_s7 }
   0x3   :  { %5693 = sst [smem:[#allocation15_spill]] %s5689_s13 }
   0x4   :  { %18 = vsyncpa [#allocation3], 0 }
   0x5   :  { %19 = vsyncpa [#allocation5], 0 }
   0x6   :  { %20 = vsyncpa [#allocation8], 0  ;;  %s5444_s25 = smov 0  }
   0x7 LB: > { %5694 = sst [smem:[#allocation12_spill]] %s5362_s25  ;;  %s5453_s29 = sadd.s32 4294967295, %s5362_s25   ;;  %s5362_s25 = sphi %s5444_s25, %s26_s25  }
   0x8   : > { %s5695_s7 = sld [smem:[#allocation14_spill]]  ;;  %p3501_p0 = scmp.ge.s32.totalorder %s5362_s25, 1 }
   0x9   : > { %p335_p1 = scmp.lt.s32.totalorder %s5362_s25, 3  ;;  %p5186_p2 = scmp.eq.s32.totalorder %s5453_s29, 0 }
   0xa   : > { %s5364_s14 = smov [#allocation4]   ;;  %s5697_s5 = sld [smem:[#allocation13_spill]] }
   0xb   : > { %p5458_p3 = pnand %p3501_p0, %p335_p1  ;;  %s377_s15 = sshll.u32 %s5364_s14, 4  ;;  %s378_s15 = int_to_ptr.vmem [resolvable:$true] %s377_s15 }
   0xc   : > { %s5365_s20 = smov [#allocation2]   ;;  %s5366_s22 = smov 512  }
   0xd   : > { %p5173_p4 = pneg %p5458_p3  ;;  %s360_s21 = sshll.u32 %s5365_s20, 4  ;;  %s361_s21 = int_to_ptr.vmem [resolvable:$true] %s360_s21 }
   0xe   : > { %s375_s28 = sshll.u32 %s5695_s7, 4  ;;  %s5367_s23 = smov 32   ;;  %s376_s28 = int_to_ptr.hbm [resolvable:$true] %s375_s28 }
   0xf   : > { %p5469_p5 = pnand %p5186_p2, %p5173_p4  ;;  %s392_s27 = sshll.u32 %s5685_s9, 4  ;;  %s393_s27 = int_to_ptr.hbm [resolvable:$true] %s392_s27 }
  0x10   : > { %s358_s18 = sshll.u32 %s5697_s5, 4  ;;  %s5368_s14 = smov 64   ;;  %s359_s18 = int_to_ptr.hbm [resolvable:$true] %s358_s18 }
  0x11   : > { %5179 = dma.hbm_to_vmem [thread:$0]  (!%p5469_p5), %s376_s28, 8192, %s378_s15, [#allocation5], %s5366_s22, %s5366_s22, %s5367_s23  }
  0x12   : > { %s5369_s16 = smov 4   ;;  %s5370_s17 = smov [#allocation6]  }
  0x13   : > { %5176 = dma.hbm_to_vmem [thread:$0]  (!%p5469_p5), %s359_s18, 1024, %s361_s21, [#allocation3], %s5368_s14, %s5368_s14, %s5369_s16  }
  0x14   : > { %s394_s5 = sshll.u32 %s5370_s17, 4  ;;  %s5371_s7 = smov 192   ;;  %s395_s5 = int_to_ptr.vmem [resolvable:$true] %s394_s5 }
  0x15   : > { %s5372_s20 = smov 12   ;;  %s409_s28 = sshll.u32 %s5687_s11, 4  ;;  %s410_s28 = int_to_ptr.hbm [resolvable:$true] %s409_s28 }
  0x16   : > { %5182 = dma.hbm_to_vmem [thread:$0]  (!%p5469_p5), %s393_s27, 24576, %s395_s5, [#allocation5], %s5371_s7, %s5371_s7, %s5372_s20  }
  0x17   : > { %s5373_s15 = smov [#allocation7]   ;;  %437 = sbr.rel (%p5458_p3) target bundleno = 1305 (0x519), region = 72 }
  0x18   : > { %s411_s22 = sshll.u32 %s5373_s15, 4  ;;  %s412_s22 = int_to_ptr.vmem [resolvable:$true] %s411_s22 }
  0x19   : > { %5185 = dma.hbm_to_vmem [thread:$0]  (!%p5469_p5), %s410_s28, 6144, %s412_s22, [#allocation8], %s5368_s14, %s5368_s14, %s5369_s16  }
  0x1c   : > { %5349 = dma.done.wait (%p5186_p2), [#allocation3], 1024  }
  0x1d   : > { %5351 = vsyncadd (%p5186_p2), [#allocation3], 4294966272 }
  0x1e   : > { %5353 = dma.done.wait (%p5186_p2), [#allocation5], 32768  }
  0x1f   : > { %5355 = vsyncadd (%p5186_p2), [#allocation5], 4294934528 }
  0x20   : > { %5357 = dma.done.wait (%p5186_p2), [#allocation8], 6144  }
  0x21   : > { %5359 = vsyncadd (%p5186_p2), [#allocation8], 4294961152  ;;  %v4836_v0 = vld [vmem:[%s5677_s1 + $0x38] sm:$0xff]  ;;  %v4835_v1 = vld [vmem:[%s5677_s1 + $0x30] sm:$0xff]  ;;  %p495_p6 = scmp.lt.s32.totalorder %s5453_s29, 1  ;;  %s5699_s20 = sld [smem:[#allocation15_spill]] }
  0x22   : > { %573 = vmatpush.bf16.msra.mxu0 %v4836_v0  ;;  %v4834_v2 = vld [vmem:[%s5677_s1 + $0x28] sm:$0xff]  ;;  %v4833_v3 = vld [vmem:[%s5677_s1 + $0x20] sm:$0xff]  ;;  %v4832_v4 = vld [vmem:[%s5677_s1 + $0x18] sm:$0xff] }
  0x23   : > { %v4831_v5 = vld [vmem:[%s5677_s1 + $0x10] sm:$0xff]  ;;  %s5702_s29 = smov (!%p495_p6, %s5453_s29), 1  ;;  %v4830_v6 = vld [vmem:[%s5677_s1 + $0x8] sm:$0xff]  ;;  %v4829_v7 = vld [vmem:[%s5677_s1] sm:$0xff] }
  0x24   : > { %s3512_s17 = sshll.u32 %s5702_s29, 2  ;;  %v5212_v9 = vld [vmem:[%s5678_s2] ss:$0 sm:$0xff]  ;;  %v4844_v14 = vld [vmem:[%s5679_s3 + $0x38] sm:$0xff]  ;;  %v4843_v15 = vld [vmem:[%s5679_s3 + $0x30] sm:$0xff]  ;;  %s3513_s14 = sshll.u32 %s5702_s29, 3 }
  0x25   : > { %s498_s5 = scalar_lea.vmem %s5676_s0, %s3512_s17  ;;  %671 = vmatpush.bf16.msra.mxu1 %v4844_v14  ;;  %v4842_v16 = vld [vmem:[%s5679_s3 + $0x28] sm:$0xff]  ;;  %v4841_v17 = vld [vmem:[%s5679_s3 + $0x20] sm:$0xff]  ;;  %v4840_v18 = vld [vmem:[%s5679_s3 + $0x18] sm:$0xff] }
  0x26   : > { %574 = vmatpush.bf16.msra.mxu0 %v4835_v1  ;;  %v5533_v8 = vld [vmem:[%s498_s5] sm:$0xf]  ;;  %v4839_v19 = vld [vmem:[%s5679_s3 + $0x10] sm:$0xff]  ;;  %v4838_v20 = vld [vmem:[%s5679_s3 + $0x8] sm:$0xff] }
  0x27   : > { %v4837_v21 = vld [vmem:[%s5679_s3] sm:$0xff]  ;;  %v4852_v23 = vld [vmem:[#allocation2 + $0x38] sm:$0xff]  ;;  %v4851_v25 = vld [vmem:[#allocation2 + $0x30] sm:$0xff]  ;;  %s502_s28 = scalar_lea.vmem %s5699_s20, %s3513_s14 }
  0x28   : > { %754 = vmatpush.bf16.msra.mxu2 %v4852_v23  ;;  %v4850_v26 = vld [vmem:[#allocation2 + $0x28] sm:$0xff]  ;;  %v4849_v29 = vld [vmem:[#allocation2 + $0x20] sm:$0xff]  ;;  %v4848_v32 = vld [vmem:[#allocation2 + $0x18] sm:$0xff] }
  0x29   : > { %672 = vmatpush.bf16.msra.mxu1 %v4843_v15  ;;  %v4847_v39 = vld [vmem:[#allocation2 + $0x10] sm:$0xff]  ;;  %v4846_v40 = vld [vmem:[#allocation2 + $0x8] sm:$0xff]  ;;  %v4845_v41 = vld [vmem:[#allocation2] sm:$0xff] }
  0x2a   : > { %575 = vmatpush.bf16.msra.mxu0 %v4834_v2  ;;  %v5213_v42 = vld [vmem:[%s5680_s4] ss:$0 sm:$0xff]  ;;  %v4909_v50 = vld [vmem:[#allocation4 + $0x1c4] sm:$0xf]  ;;  %v3844_v53 = vld [vmem:[#allocation4 + $0x1c8] sm:$0xf] }
  0x2b   : > { %v3836_v48 = vld [vmem:[#allocation4 + $0x1c0] sm:$0xf]  ;;  %v3838_v52 = vld [vmem:[#allocation4 + $0x1e0] sm:$0xf0]  ;;  %v4914_v54 = vld [vmem:[#allocation4 + $0x1e4] sm:$0xf0] }
  0x2c   : > { %755 = vmatpush.bf16.msra.mxu2 %v4851_v25  ;;  %v4913_v49 = vld [vmem:[#allocation4 + $0x1dc] sm:$0xf0]  ;;  %v3841_v55 = vor.u32 %v4909_v50, %v3838_v52  ;;  %v3845_v56 = vor.u32 %v4914_v54, %v3844_v53  ;;  %v4910_v57 = vld [vmem:[#allocation4 + $0x1cc] sm:$0xf]  ;;  %v4901_v62 = vld [vmem:[#allocation4 + $0x184] sm:$0xf] }
  0x2d   : > { %673 = vmatpush.bf16.msra.mxu1 %v4842_v16  ;;  %v3837_v51 = vor.u32 %v4913_v49, %v3836_v48  ;;  %v3846_v58 = vld [vmem:[#allocation4 + $0x1e8] sm:$0xf0]  ;;  %v3804_v59 = vld [vmem:[#allocation4 + $0x180] sm:$0xf]  ;;  %v3806_v63 = vld [vmem:[#allocation4 + $0x1a0] sm:$0xf0] }
  0x2e   : > { %576 = vmatpush.bf16.msra.mxu0 %v4833_v3  ;;  %v3849_v60 = vor.u32 %v4910_v57, %v3846_v58  ;;  %v4905_v61 = vld [vmem:[#allocation4 + $0x19c] sm:$0xf0]  ;;  %v3809_v1 = vor.u32 %v4901_v62, %v3806_v63  ;;  %v3812_v2 = vld [vmem:[#allocation4 + $0x188] sm:$0xf]  ;;  %v4894_v16 = vld [vmem:[#allocation4 + $0x14c] sm:$0xf] }
  0x2f   : > { %1196 = vmatpush.bf16.msra.mxu3 %v3837_v51  ;;  %v3805_v0 = vor.u32 %v4905_v61, %v3804_v59  ;;  %v4906_v3 = vld [vmem:[#allocation4 + $0x1a4] sm:$0xf0]  ;;  %v3718_v48 = vld [vmem:[#allocation4 + $0xe8] sm:$0xf0]  ;;  %v3676_v50 = vld [vmem:[#allocation4 + $0x80] sm:$0xf] }
  0x30   : > { %756 = vmatpush.bf16.msra.mxu2 %v4850_v26  ;;  %v4898_v15 = vld [vmem:[#allocation4 + $0x164] sm:$0xf0]  ;;  %v4873_v51 = vld [vmem:[#allocation4 + $0x9c] sm:$0xf0]  ;;  %v4869_v52 = vld [vmem:[#allocation4 + $0x84] sm:$0xf] }
  0x31   : > { %674 = vmatpush.bf16.msra.mxu1 %v4841_v17  ;;  %v3782_v17 = vld [vmem:[#allocation4 + $0x168] sm:$0xf0]  ;;  %v3748_v25 = vld [vmem:[#allocation4 + $0x108] sm:$0xf]  ;;  %v3677_v53 = vor.u32 %v4873_v51, %v3676_v50  ;;  %v3678_v54 = vld [vmem:[#allocation4 + $0xa0] sm:$0xf0] }
  0x32   : > { %577 = vmatpush.bf16.msra.mxu0 %v4832_v4  ;;  %v4902_v4 = vld [vmem:[#allocation4 + $0x18c] sm:$0xf]  ;;  %v3785_v23 = vor.u32 %v4894_v16, %v3782_v17  ;;  %v4890_v26 = vld [vmem:[#allocation4 + $0x124] sm:$0xf0]  ;;  %v3681_v57 = vor.u32 %v4869_v52, %v3678_v54  ;;  %v3644_v62 = vld [vmem:[#allocation4 + $0x40] sm:$0xf] }
  0x33   : > { %1197 = vmatpush.bf16.msra.mxu3 %v3805_v0  ;;  %v4870_v59 = vld [vmem:[#allocation4 + $0x8c] sm:$0xf]  ;;  %v4865_v63 = vld [vmem:[#allocation4 + $0x5c] sm:$0xf0]  ;;  %v4861_v0 = vld [vmem:[#allocation4 + $0x44] sm:$0xf] }
  0x34   : > { %757 = vmatpush.bf16.msra.mxu2 %v4849_v29  ;;  %v3620_v16 = vld [vmem:[#allocation4 + $0x8] sm:$0xf]  ;;  %v4895_v50 = vld [vmem:[#allocation4 + $0x154] sm:$0xf]  ;;  %v4900_v54 = vld [vmem:[#allocation4 + $0x174] sm:$0xf0] }
  0x35   : > { %675 = vmatpush.bf16.msra.mxu1 %v4840_v18  ;;  %v4858_v17 = vld [vmem:[#allocation4 + $0x24] sm:$0xf0]  ;;  %v3790_v52 = vld [vmem:[#allocation4 + $0x170] sm:$0xf0] }
  0x36   : > { %578 = vmatpush.bf16.msra.mxu0 %v4831_v5  ;;  %v3813_v5 = vor.u32 %v4906_v3, %v3812_v2  ;;  %v3646_v2 = vld [vmem:[#allocation4 + $0x60] sm:$0xf0]  ;;  %v3652_v3 = vld [vmem:[#allocation4 + $0x48] sm:$0xf] }
  0x38   : > { %758 = vmatpush.bf16.msra.mxu2 %v4848_v32 }
  0x39   : > { %676 = vmatpush.bf16.msra.mxu1 %v4839_v19 }
  0x3a   : > { %579 = vmatpush.bf16.msra.mxu0 %v4830_v6  ;;  %v3814_v6 = vld [vmem:[#allocation4 + $0x1a8] sm:$0xf0] }
  0x3c   : > { %759 = vmatpush.bf16.msra.mxu2 %v4847_v39  ;;  %v4881_v39 = vld [vmem:[#allocation4 + $0xdc] sm:$0xf0] }
  0x3d   : > { %677 = vmatpush.bf16.msra.mxu1 %v4838_v20  ;;  %v3740_v20 = vld [vmem:[#allocation4 + $0x100] sm:$0xf] }
  0x3e   : > { %580 = vmatpush.bf16.msra.mxu0 %v4829_v7  ;;  %v3772_v7 = vld [vmem:[#allocation4 + $0x140] sm:$0xf] }
  0x40   : > { %760 = vmatpush.bf16.msra.mxu2 %v4846_v40  ;;  %v4877_v40 = vld [vmem:[#allocation4 + $0xc4] sm:$0xf] }
  0x41   : > { %581 = vmatmul.bf16.vlgmr.msra.gmra.mxu0 %v5533_v8  ;;  %678 = vmatpush.bf16.msra.mxu1 %v4837_v21  ;;  %v4889_v21 = vld [vmem:[#allocation4 + $0x11c] sm:$0xf0] }
  0x42   : > { %1209 = vmatpush.bf16.msrb.mxu0 %v3841_v55  ;;  %v3741_v29 = vor.u32 %v4889_v21, %v3740_v20  ;;  %v3684_v55 = vld [vmem:[#allocation4 + $0x88] sm:$0xf]  ;;  %v4854_v20 = vld [vmem:[#allocation4 + $0xc] sm:$0xf] }
  0x43   : > { %v3622_v21 = vld [vmem:[#allocation4 + $0x28] sm:$0xf0] }
  0x44   : > { %761 = vmatpush.bf16.msra.mxu2 %v4845_v41 }
  0x45   : > { %1222 = vmatpush.bf16.msrb.mxu1 %v3845_v56  ;;  %v4874_v56 = vld [vmem:[#allocation4 + $0xa4] sm:$0xf0] }
  0x46   : > { %1210 = vmatpush.bf16.msrb.mxu0 %v3809_v1  ;;  %v3685_v58 = vor.u32 %v4874_v56, %v3684_v55  ;;  %v3645_v1 = vor.u32 %v4865_v63, %v3644_v62  ;;  %v3793_v55 = vor.u32 %v4895_v50, %v3790_v52  ;;  %v4887_v62 = vld [vmem:[#allocation4 + $0x114] sm:$0xf] }
  0x47   : > { %v4855_v50 = vld [vmem:[#allocation4 + $0x14] sm:$0xf] }
  0x48   : > { %1235 = vmatpush.bf16.msrb.mxu2 %v3849_v60  ;;  %v3686_v60 = vld [vmem:[#allocation4 + $0xa8] sm:$0xf0] }
  0x49   : > { %1223 = vmatpush.bf16.msrb.mxu1 %v3813_v5  ;;  %v3689_v61 = vor.u32 %v4870_v59, %v3686_v60  ;;  %v3649_v5 = vor.u32 %v4861_v0, %v3646_v2  ;;  %v3756_v60 = vld [vmem:[#allocation4 + $0x110] sm:$0xf]  ;;  %v3758_v0 = vld [vmem:[#allocation4 + $0x130] sm:$0xf0]  ;;  %v4892_v2 = vld [vmem:[#allocation4 + $0x134] sm:$0xf0] }
  0xbe   : > { %v582_v10 = vpop.f32.mrf.mxu0 }
  0xbf   : > { %v583_v11 = vadd.f32 %v5212_v9, %v582_v10  ;;  %v4897_v9 = vld [vmem:[#allocation4 + $0x15c] sm:$0xf0]  ;;  %v3817_v10 = vor.u32 %v4902_v4, %v3814_v6  ;;  %v4866_v4 = vld [vmem:[#allocation4 + $0x64] sm:$0xf0] }
  0xc0   : > { %v3773_v14 = vor.u32 %v4897_v9, %v3772_v7  ;;  %v3653_v6 = vor.u32 %v4866_v4, %v3652_v3  ;;  %v4862_v7 = vld [vmem:[#allocation4 + $0x4c] sm:$0xf]  ;;  %v3761_v3 = vor.u32 %v4887_v62, %v3758_v0 }
  0xc1   : > { %v586_v12 = vmul.f32 %v583_v11, %v583_v11  ;;  %1236 = vmatpush.bf16.msrb.mxu2 %v3817_v10  ;;  %v3654_v9 = vld [vmem:[#allocation4 + $0x68] sm:$0xf0] }
  0xc2   : > { %1198 = vmatpush.bf16.msra.mxu3 %v3773_v14  ;;  %v3657_v10 = vor.u32 %v4862_v7, %v3654_v9  ;;  %v3724_v9 = vld [vmem:[#allocation4 + $0xd0] sm:$0xf] }
  0xc3   : > { %587 = vadd.xlane.f32.xlu0 %v586_v12  ;;  %v3774_v12 = vld [vmem:[#allocation4 + $0x160] sm:$0xf0] }
  0xc5   : > { %1237 = vmatpush.bf16.msrb.mxu2 %v3785_v23  ;;  %v3625_v23 = vor.u32 %v4854_v20, %v3622_v21  ;;  %v3734_v20 = vld [vmem:[#allocation4 + $0xf8] sm:$0xf0]  ;;  %v3692_v21 = vld [vmem:[#allocation4 + $0x90] sm:$0xf] }
  0xc6   : > { %v584_v13 = vpop.f32.mrf.mxu0  ;;  %1199 = vmatpush.bf16.msra.mxu3 %v3741_v29  ;;  %v3860_v29 = vld [vmem:[#allocation4 + $0x1d8] sm:$0xf] }
  0xc7   : > { %v3780_v13 = vld [vmem:[#allocation4 + $0x148] sm:$0xf] }
  0xc8   : > { %v3781_v19 = vor.u32 %v4898_v15, %v3780_v13  ;;  %v4853_v13 = vld [vmem:[#allocation4 + $0x4] sm:$0xf] }
  0xc9   : > { %v3614_v15 = vld [vmem:[#allocation4 + $0x20] sm:$0xf0] }
  0xca   : > { %1224 = vmatpush.bf16.msrb.mxu1 %v3781_v19  ;;  %v3621_v19 = vor.u32 %v4858_v17, %v3620_v16 }
 0x136   : > { %v588_v22 = vpop.xlane.xlu0 %587 }
 0x137   : > { %v589_v24 = vmax.f32 %v588_v22, 1e-24  ;;  %v4885_v22 = vld [vmem:[#allocation4 + $0x104] sm:$0xf] }
 0x139   : > { %5216 = vrsqrt.f32 %v589_v24  ;;  %vm596_vm1 = vweird.f32 %v589_v24 }
 0x13f   : > { %v5217_v27 = vpop.eup %5216 }
 0x140   : > { %v591_v28 = vmul.f32 %v5217_v27, %v589_v24  ;;  %vm597_vm0 = vweird.f32 %v5217_v27  ;;  %v3742_v24 = vld [vmem:[#allocation4 + $0x120] sm:$0xf0] }
 0x141   : > { %vm598_vm2 = vmor %vm596_vm1, %vm597_vm0 }
 0x142   : > { %v592_v30 = vmul.f32 %v5217_v27, %v591_v28  ;;  %v3750_v28 = vld [vmem:[#allocation4 + $0x128] sm:$0xf0] }
 0x144   : > { %v593_v31 = vmul.f32 0.5, %v592_v30  ;;  %v3745_v30 = vor.u32 %v4885_v22, %v3742_v24  ;;  %v3852_v22 = vld [vmem:[#allocation4 + $0x1d0] sm:$0xf] }
 0x145   : > { %v4915_v24 = vld [vmem:[#allocation4 + $0x1ec] sm:$0xf0] }
 0x146   : > { %v594_v33 = vsub.f32 1.5, %v593_v31  ;;  %v3749_v31 = vor.u32 %v4890_v26, %v3748_v25  ;;  %v4911_v25 = vld [vmem:[#allocation4 + $0x1d4] sm:$0xf] }
 0x147   : > { %v3854_v26 = vld [vmem:[#allocation4 + $0x1f0] sm:$0xf0] }
 0x148   : > { %v595_v34 = vmul.f32 %v5217_v27, %v594_v33  ;;  %1225 = vmatpush.bf16.msrb.mxu1 %v3749_v31  ;;  %v5214_v33 = vld [vmem:[%s5682_s6] ss:$0 sm:$0xff]  ;;  %v4912_v31 = vld [vmem:[#allocation4 + $0x1dc] sm:$0xf] }
 0x14a   : > { %v599_v35 = vsel %vm598_vm2, %v5217_v27, %v595_v34  ;;  %v4886_v27 = vld [vmem:[#allocation4 + $0x10c] sm:$0xf] }
 0x14b   : > { %v600_v36 = vmul.f32 %v599_v35, %v583_v11  ;;  %v4893_v11 = vld [vmem:[#allocation4 + $0x144] sm:$0xf]  ;;  %v3753_v32 = vor.u32 %v4886_v27, %v3750_v28  ;;  %v3853_v27 = vor.u32 %v4915_v24, %v3852_v22  ;;  %v3857_v28 = vor.u32 %v4911_v25, %v3854_v26  ;;  %v4875_v24 = vld [vmem:[#allocation4 + $0xac] sm:$0xf0]  ;;  %v4871_v25 = vld [vmem:[#allocation4 + $0x94] sm:$0xf] }
 0x14c   : > { %v3777_v18 = vor.u32 %v4893_v11, %v3774_v12  ;;  %v3612_v11 = vld [vmem:[#allocation4] sm:$0xf]  ;;  %v3693_v26 = vor.u32 %v4875_v24, %v3692_v21  ;;  %v4132_v24 = vld [vmem:[#allocation6 + $0x210] sm:$0xf] }
 0x14d   : > { %5218 = vtanh.f32 %v600_v36  ;;  %1238 = vmatpush.bf16.msrb.mxu2 %v3753_v32  ;;  %v4857_v12 = vld [vmem:[#allocation4 + $0x1c] sm:$0xf0] }
 0x14e   : > { %1211 = vmatpush.bf16.msrb.mxu0 %v3777_v18  ;;  %v3613_v14 = vor.u32 %v4857_v12, %v3612_v11  ;;  %v3617_v18 = vor.u32 %v4853_v13, %v3614_v15  ;;  %v4879_v11 = vld [vmem:[#allocation4 + $0xd4] sm:$0xf]  ;;  %v4884_v15 = vld [vmem:[#allocation4 + $0xf4] sm:$0xf0] }
 0x14f   : > { %v3726_v13 = vld [vmem:[#allocation4 + $0xf0] sm:$0xf0] }
 0x150   : > { %v3729_v17 = vor.u32 %v4879_v11, %v3726_v13  ;;  %v4048_v11 = vld [vmem:[#allocation6 + $0x168] sm:$0xf] }
 0x151   : > { %v4144_v13 = vld [vmem:[#allocation6 + $0x228] sm:$0xf] }
 0x152   : > { %1212 = vmatpush.bf16.msrb.mxu0 %v3745_v30  ;;  %v4916_v30 = vld [vmem:[#allocation4 + $0x1f4] sm:$0xf0] }
 0x153   : > { %v5219_v37 = vpop.eup %5218  ;;  %v3861_v32 = vor.u32 %v4916_v30, %v3860_v29  ;;  %v4876_v29 = vld [vmem:[#allocation4 + $0xb4] sm:$0xf0] }
 0x154   : > { %v602_v38 = vpack.c.bf16 %v5219_v37, %v5219_v37 }
 0x156   : > { %679 = vmatmul.bf16.vlgmr.msra.gmra.mxu1 %v602_v38  ;;  %v3708_v38 = vld [vmem:[#allocation4 + $0xc0] sm:$0xf] }
 0x157   : > { %v3709_v41 = vor.u32 %v4881_v39, %v3708_v38  ;;  %v4903_v39 = vld [vmem:[#allocation4 + $0x194] sm:$0xf] }
 0x159   : > { %1200 = vmatpush.bf16.msra.mxu3 %v3709_v41  ;;  %v3828_v41 = vld [vmem:[#allocation4 + $0x198] sm:$0xf] }
 0x15d   : > { %1201 = vmatpush.bf16.msra.mxu3 %v3677_v53  ;;  %v3796_v53 = vld [vmem:[#allocation4 + $0x158] sm:$0xf] }
 0x15e   : > { %v3797_v56 = vor.u32 %v4900_v54, %v3796_v53  ;;  %v3636_v53 = vld [vmem:[#allocation4 + $0x18] sm:$0xf] }
 0x15f   : > { %v4860_v54 = vld [vmem:[#allocation4 + $0x34] sm:$0xf0] }
 0x160   : > { %v3637_v62 = vor.u32 %v4860_v54, %v3636_v53  ;;  %v4930_v53 = vld [vmem:[#allocation6 + $0x68] sm:$0xf0]  ;;  %v4204_v54 = vld [vmem:[#allocation6 + $0x2a0] sm:$0xf] }
 0x161   : > { %1202 = vmatpush.bf16.msra.mxu3 %v3645_v1  ;;  %v3764_v1 = vld [vmem:[#allocation4 + $0x118] sm:$0xf] }
 0x162   : > { %v3765_v4 = vor.u32 %v4892_v2, %v3764_v1 }
 0x165   : > { %1203 = vmatpush.bf16.msra.mxu3 %v3613_v14  ;;  %v3732_v14 = vld [vmem:[#allocation4 + $0xd8] sm:$0xf] }
 0x169   : > { %1248 = vmatpush.bf16.msrb.mxu3 %v3853_v27  ;;  %v3694_v27 = vld [vmem:[#allocation4 + $0xb0] sm:$0xf0] }
 0x16a   : > { %v3697_v30 = vor.u32 %v4871_v25, %v3694_v27  ;;  %v3940_v27 = vld [vmem:[#allocation6 + $0x90] sm:$0xf] }
 0x1d3   : > { %v680_v43 = vpop.f32.mrf.mxu1 }
 0x1d4   : > { %v681_v44 = vadd.f32 %v5213_v42, %v680_v43  ;;  %v3710_v42 = vld [vmem:[#allocation4 + $0xe0] sm:$0xf0]  ;;  %v3716_v43 = vld [vmem:[#allocation4 + $0xc8] sm:$0xf] }
 0x1d6   : > { %5220 = vtanh.f32 %v681_v44  ;;  %v4882_v44 = vld [vmem:[#allocation4 + $0xe4] sm:$0xf0] }
 0x1db   : > { %v682_v45 = vpop.f32.mrf.mxu1 }
 0x1dc   : > { %v5221_v46 = vpop.eup %5220  ;;  %v3713_v45 = vor.u32 %v4877_v40, %v3710_v42  ;;  %v3822_v40 = vld [vmem:[#allocation4 + $0x1b0] sm:$0xf0] }
 0x1dd   : > { %v685_v47 = vpack.c.bf16 %v5221_v46, %v5221_v46  ;;  %v3717_v46 = vor.u32 %v4882_v44, %v3716_v43  ;;  %v3825_v42 = vor.u32 %v4903_v39, %v3822_v40  ;;  %v4908_v43 = vld [vmem:[#allocation4 + $0x1b4] sm:$0xf0]  ;;  %v4904_v44 = vld [vmem:[#allocation4 + $0x19c] sm:$0xf]  ;;  %v3662_v39 = vld [vmem:[#allocation4 + $0x70] sm:$0xf0] }
 0x1de   : > { %1213 = vmatpush.bf16.msrb.mxu0 %v3713_v45  ;;  %v3830_v45 = vld [vmem:[#allocation4 + $0x1b8] sm:$0xf0]  ;;  %v3668_v40 = vld [vmem:[#allocation4 + $0x58] sm:$0xf] }
 0x1df   : > { %762 = vmatmul.bf16.vlgmr.msra.gmra.mxu2 %v685_v47  ;;  %v4878_v47 = vld [vmem:[#allocation4 + $0xcc] sm:$0xf]  ;;  %1226 = vmatpush.bf16.msrb.mxu1 %v3717_v46  ;;  %v3829_v46 = vor.u32 %v4908_v43, %v3828_v41  ;;  %v4868_v41 = vld [vmem:[#allocation4 + $0x74] sm:$0xf0]  ;;  %v782_v43 = vlaneseq }
 0x1e0   : > { %v3721_v49 = vor.u32 %v4878_v47, %v3718_v48  ;;  %v3833_v47 = vor.u32 %v4904_v44, %v3830_v45  ;;  %v3788_v48 = vld [vmem:[#allocation4 + $0x150] sm:$0xf] }
 0x1e2   : > { %1239 = vmatpush.bf16.msrb.mxu2 %v3721_v49  ;;  %1214 = vmatpush.bf16.msrb.mxu0 %v3681_v57  ;;  %v4899_v49 = vld [vmem:[#allocation4 + $0x16c] sm:$0xf0]  ;;  %v4896_v57 = vld [vmem:[#allocation4 + $0x15c] sm:$0xf] }
 0x1e3   : > { %1227 = vmatpush.bf16.msrb.mxu1 %v3685_v58  ;;  %v3789_v51 = vor.u32 %v4899_v49, %v3788_v48  ;;  %v3798_v58 = vld [vmem:[#allocation4 + $0x178] sm:$0xf0]  ;;  %v3669_v48 = vor.u32 %v4868_v41, %v3668_v40  ;;  %v4859_v49 = vld [vmem:[#allocation4 + $0x2c] sm:$0xf0]  ;;  %v3928_v40 = vld [vmem:[#allocation6 + $0x78] sm:$0xf] }
 0x1e4   : > { %v3801_v59 = vor.u32 %v4896_v57, %v3798_v58  ;;  %v3638_v57 = vld [vmem:[#allocation4 + $0x38] sm:$0xf0]  ;;  %v783_v58 = vand.u32 127, %v782_v43  ;;  %v4933_v41 = vld [vmem:[#allocation6 + $0x80] sm:$0xf0] }
 0x1e5   : > { %v5005_v43 = vld [vmem:[#allocation6 + $0x2c0] sm:$0xf0] }
 0x1e6   : > { %1240 = vmatpush.bf16.msrb.mxu2 %v3689_v61  ;;  %1215 = vmatpush.bf16.msrb.mxu0 %v3649_v5  ;;  %v4891_v61 = vld [vmem:[#allocation4 + $0x12c] sm:$0xf0]  ;;  %v4888_v5 = vld [vmem:[#allocation4 + $0x11c] sm:$0xf]  ;;  %vm784_vm3 = vcmp.ge.s32.totalorder %v783_v58, 32 }
 0x1e7   : > { %1228 = vmatpush.bf16.msrb.mxu1 %v3653_v6  ;;  %v3757_v63 = vor.u32 %v4891_v61, %v3756_v60  ;;  %v3766_v6 = vld [vmem:[#allocation4 + $0x138] sm:$0xf0]  ;;  %vm787_vm5 = vmpackc.low %vm784_vm3, %vm784_vm3  ;;  %v4000_v58 = vld [vmem:[#allocation6 + $0x108] sm:$0xf] }
 0x1e8   : > { %v3769_v7 = vor.u32 %v4888_v5, %v3766_v6 }
 0x1ea   : > { %1241 = vmatpush.bf16.msrb.mxu2 %v3657_v10  ;;  %1216 = vmatpush.bf16.msrb.mxu0 %v3617_v18  ;;  %v4883_v10 = vld [vmem:[#allocation4 + $0xec] sm:$0xf0]  ;;  %v3733_v18 = vor.u32 %v4884_v15, %v3732_v14  ;;  %v4987_v14 = vld [vmem:[#allocation6 + $0x230] sm:$0xf0]  ;;  %v3952_v15 = vld [vmem:[#allocation6 + $0xa8] sm:$0xf] }
 0x1eb   : > { %1229 = vmatpush.bf16.msrb.mxu1 %v3621_v19  ;;  %v3725_v12 = vor.u32 %v4883_v10, %v3724_v9  ;;  %v4880_v19 = vld [vmem:[#allocation4 + $0xdc] sm:$0xf] }
 0x1ee   : > { %1242 = vmatpush.bf16.msrb.mxu2 %v3625_v23  ;;  %1261 = vmatpush.bf16.msra.mxu0 %v3857_v28  ;;  %v3737_v23 = vor.u32 %v4880_v19, %v3734_v20  ;;  %v3700_v28 = vld [vmem:[#allocation4 + $0x98] sm:$0xf]  ;;  %v5011_v19 = vld [vmem:[#allocation6 + $0x2f0] sm:$0xf0] }
 0x1ef   : > { %1274 = vmatpush.bf16.msra.mxu1 %v3861_v32  ;;  %v4872_v32 = vld [vmem:[#allocation4 + $0x9c] sm:$0xf] }
 0x1f2   : > { %1262 = vmatpush.bf16.msra.mxu0 %v3825_v42  ;;  %v4864_v42 = vld [vmem:[#allocation4 + $0x5c] sm:$0xf] }
 0x1f3   : > { %1275 = vmatpush.bf16.msra.mxu1 %v3829_v46  ;;  %v3670_v46 = vld [vmem:[#allocation4 + $0x78] sm:$0xf0] }
 0x1f4   : > { %v3673_v52 = vor.u32 %v4864_v42, %v3670_v46  ;;  %v4216_v42 = vld [vmem:[#allocation6 + $0x2b8] sm:$0xf]  ;;  %v4012_v46 = vld [vmem:[#allocation6 + $0x120] sm:$0xf] }
 0x1f6   : > { %1263 = vmatpush.bf16.msra.mxu0 %v3793_v55 }
 0x1f7   : > { %1276 = vmatpush.bf16.msra.mxu1 %v3797_v56  ;;  %v4856_v56 = vld [vmem:[#allocation4 + $0x1c] sm:$0xf] }
 0x1f8   : > { %v3641_v0 = vor.u32 %v4856_v56, %v3638_v57 }
 0x1fa   : > { %1264 = vmatpush.bf16.msra.mxu0 %v3761_v3 }
 0x1fb   : > { %1277 = vmatpush.bf16.msra.mxu1 %v3765_v4  ;;  %v788_v4 = vsel %vm787_vm5, %v5533_v8, 0  ;;  %v4036_v8 = vld [vmem:[#allocation6 + $0x150] sm:$0xf] }
 0x1fe   : > { %1265 = vmatpush.bf16.msra.mxu0 %v3729_v17  ;;  %v4939_v17 = vld [vmem:[#allocation6 + $0xb0] sm:$0xf0] }
 0x1ff   : > { %1278 = vmatpush.bf16.msra.mxu1 %v3733_v18  ;;  %v4240_v18 = vld [vmem:[#allocation6 + $0x2e8] sm:$0xf]  ;;  %v3953_v25 = vor.u32 %v4939_v17, %v3952_v15  ;;  %v4180_v15 = vld [vmem:[#allocation6 + $0x270] sm:$0xf] }
 0x202   : > { %1266 = vmatpush.bf16.msra.mxu0 %v3697_v30  ;;  %v5008_v30 = vld [vmem:[#allocation6 + $0x2d8] sm:$0xf0] }
 0x262   : > { %v763_v34 = vpop.f32.mrf.mxu2 }
 0x263   : > { %v5569_v35 = vadd.f32 %v5214_v33, %v763_v34  ;;  %v3862_v33 = vld [vmem:[#allocation4 + $0x1f8] sm:$0xf0]  ;;  %v3820_v34 = vld [vmem:[#allocation4 + $0x190] sm:$0xf] }
 0x265   : > { %v767_v36 = vmul.f32 %v5569_v35, %v5569_v35 }
 0x267   : > { %768 = vadd.xlane.f32.xlu0 %v767_v36  ;;  %v4907_v36 = vld [vmem:[#allocation4 + $0x1ac] sm:$0xf0] }
 0x268   : > { %v3821_v38 = vor.u32 %v4907_v36, %v3820_v34  ;;  %v3660_v34 = vld [vmem:[#allocation4 + $0x50] sm:$0xf] }
 0x26a   : > { %v765_v37 = vpop.f32.mrf.mxu2  ;;  %1249 = vmatpush.bf16.msrb.mxu3 %v3821_v38  ;;  %v4863_v38 = vld [vmem:[#allocation4 + $0x54] sm:$0xf] }
 0x26b   : > { %v3865_v37 = vor.u32 %v4912_v31, %v3862_v33  ;;  %v3701_v31 = vor.u32 %v4876_v29, %v3700_v28  ;;  %v3702_v33 = vld [vmem:[#allocation4 + $0xb8] sm:$0xf0]  ;;  %v3665_v45 = vor.u32 %v4863_v38, %v3662_v39  ;;  %v4228_v29 = vld [vmem:[#allocation6 + $0x2d0] sm:$0xf] }
 0x26c   : > { %v3705_v36 = vor.u32 %v4872_v32, %v3702_v33  ;;  %v4936_v28 = vld [vmem:[#allocation6 + $0x98] sm:$0xf0]  ;;  %v4024_v33 = vld [vmem:[#allocation6 + $0x138] sm:$0xf]  ;;  %v4229_v39 = vor.u32 %v5008_v30, %v4228_v29  ;;  %v4942_v30 = vld [vmem:[#allocation6 + $0xc8] sm:$0xf0] }
 0x26d   : > { %1287 = vmatpush.bf16.msra.mxu2 %v3865_v37  ;;  %v4867_v37 = vld [vmem:[#allocation4 + $0x6c] sm:$0xf0]  ;;  %1279 = vmatpush.bf16.msra.mxu1 %v3701_v31  ;;  %v3941_v38 = vor.u32 %v4936_v28, %v3940_v27  ;;  %v4993_v27 = vld [vmem:[#allocation6 + $0x260] sm:$0xf0]  ;;  %v3964_v28 = vld [vmem:[#allocation6 + $0xc0] sm:$0xf] }
 0x26e   : > { %1250 = vmatpush.bf16.msrb.mxu3 %v3789_v51  ;;  %v3661_v44 = vor.u32 %v4867_v37, %v3660_v34  ;;  %v3630_v51 = vld [vmem:[#allocation4 + $0x30] sm:$0xf0]  ;;  %1267 = vmatpush.bf16.msra.mxu0 %v3665_v45  ;;  %v4957_v34 = vld [vmem:[#allocation6 + $0x140] sm:$0xf0] }
 0x26f   : > { %v3633_v61 = vor.u32 %v4855_v50, %v3630_v51  ;;  %v4981_v37 = vld [vmem:[#allocation6 + $0x200] sm:$0xf0]  ;;  %v3929_v50 = vor.u32 %v4933_v41, %v3928_v40  ;;  %v4217_v51 = vor.u32 %v5005_v43, %v4216_v42  ;;  %v3868_v40 = vld [vmem:[#allocation6] sm:$0xf]  ;;  %v4918_v41 = vld [vmem:[#allocation6 + $0x8] sm:$0xf0] }
 0x270   : > { %v4156_v42 = vld [vmem:[#allocation6 + $0x240] sm:$0xf]  ;;  %v4990_v43 = vld [vmem:[#allocation6 + $0x248] sm:$0xf0] }
 0x271   : > { %1288 = vmatpush.bf16.msra.mxu2 %v3833_v47  ;;  %v3628_v47 = vld [vmem:[#allocation4 + $0x10] sm:$0xf]  ;;  %1280 = vmatpush.bf16.msra.mxu1 %v3669_v48  ;;  %v4108_v48 = vld [vmem:[#allocation6 + $0x1e0] sm:$0xf] }
 0x272   : > { %1251 = vmatpush.bf16.msrb.mxu3 %v3757_v63  ;;  %v3629_v60 = vor.u32 %v4859_v49, %v3628_v47  ;;  %1268 = vmatpush.bf16.msra.mxu0 %v3633_v61  ;;  %v4954_v47 = vld [vmem:[#allocation6 + $0x128] sm:$0xf0]  ;;  %v4975_v61 = vld [vmem:[#allocation6 + $0x1d0] sm:$0xf0] }
 0x273   : > { %v4978_v49 = vld [vmem:[#allocation6 + $0x1e8] sm:$0xf0]  ;;  %v4013_v56 = vor.u32 %v4954_v47, %v4012_v46  ;;  %v3954_v47 = vld [vmem:[#allocation6 + $0xb4] sm:$0xf0] }
 0x274   : > { %v4109_v57 = vor.u32 %v4978_v49, %v4108_v48  ;;  %v5010_v48 = vld [vmem:[#allocation6 + $0x2ec] sm:$0xf]  ;;  %v4242_v49 = vld [vmem:[#allocation6 + $0x2f4] sm:$0xf0] }
 0x275   : > { %1289 = vmatpush.bf16.msra.mxu2 %v3801_v59  ;;  %1281 = vmatpush.bf16.msra.mxu1 %v3637_v62 }
 0x276   : > { %1252 = vmatpush.bf16.msrb.mxu3 %v3725_v12  ;;  %v4963_v12 = vld [vmem:[#allocation6 + $0x170] sm:$0xf0] }
 0x277   : > { %v4049_v21 = vor.u32 %v4963_v12, %v4048_v11 }
 0x279   : > { %1290 = vmatpush.bf16.msra.mxu2 %v3769_v7  ;;  %v791_v7 = vunpack.c.l.bf16 %v788_v4 }
 0x27a   : > { %1253 = vmatpush.bf16.msrb.mxu3 %v3693_v26  ;;  %v4241_v26 = vor.u32 %v5011_v19, %v4240_v18  ;;  %v3976_v19 = vld [vmem:[#allocation6 + $0xd8] sm:$0xf] }
 0x27d   : > { %1291 = vmatpush.bf16.msra.mxu2 %v3737_v23  ;;  %v4960_v23 = vld [vmem:[#allocation6 + $0x158] sm:$0xf0] }
 0x27e   : > { %1254 = vmatpush.bf16.msrb.mxu3 %v3661_v44  ;;  %v4037_v31 = vor.u32 %v4960_v23, %v4036_v8  ;;  %v4025_v44 = vor.u32 %v4957_v34, %v4024_v33  ;;  %v4969_v8 = vld [vmem:[#allocation6 + $0x1a0] sm:$0xf0]  ;;  %v4962_v33 = vld [vmem:[#allocation6 + $0x16c] sm:$0xf]  ;;  %v4050_v34 = vld [vmem:[#allocation6 + $0x174] sm:$0xf0] }
 0x281   : > { %1292 = vmatpush.bf16.msra.mxu2 %v3705_v36  ;;  %v4120_v36 = vld [vmem:[#allocation6 + $0x1f8] sm:$0xf] }
 0x282   : > { %1255 = vmatpush.bf16.msrb.mxu3 %v3629_v60  ;;  %v4121_v45 = vor.u32 %v4981_v37, %v4120_v36  ;;  %v4096_v60 = vld [vmem:[#allocation6 + $0x1c8] sm:$0xf]  ;;  %v4986_v36 = vld [vmem:[#allocation6 + $0x22c] sm:$0xf] }
 0x285   : > { %1293 = vmatpush.bf16.msra.mxu2 %v3673_v52  ;;  %v3916_v52 = vld [vmem:[#allocation6 + $0x60] sm:$0xf] }
 0x286   : > { %v3917_v62 = vor.u32 %v4930_v53, %v3916_v52  ;;  %v4959_v52 = vld [vmem:[#allocation6 + $0x154] sm:$0xf]  ;;  %v4038_v53 = vld [vmem:[#allocation6 + $0x15c] sm:$0xf0] }
 0x289   : > { %1294 = vmatpush.bf16.msra.mxu2 %v3641_v0  ;;  %v3904_v0 = vld [vmem:[#allocation6 + $0x48] sm:$0xf] }
 0x2da   : > { %v769_v16 = vpop.xlane.xlu0 %768 }
 0x2db   : > { %v5573_v22 = vmax.f32 %v769_v16, 1e-24 }
 0x2dd   : > { %5222 = vrsqrt.f32 %v5573_v22  ;;  %vm777_vm6 = vweird.f32 %v5573_v22 }
 0x2e3   : > { %v5223_v55 = vpop.eup %5222 }
 0x2e4   : > { %v772_v59 = vmul.f32 %v5223_v55, %v5573_v22  ;;  %vm778_vm4 = vweird.f32 %v5223_v55  ;;  %v4145_v22 = vor.u32 %v4987_v14, %v4144_v13  ;;  %v3892_v13 = vld [vmem:[#allocation6 + $0x30] sm:$0xf]  ;;  %v4924_v14 = vld [vmem:[#allocation6 + $0x38] sm:$0xf0] }
 0x2e5   : > { %vm779_vm7 = vmor %vm777_vm6, %vm778_vm4  ;;  %v3893_v23 = vor.u32 %v4924_v14, %v3892_v13 }
 0x2e6   : > { %v773_v63 = vmul.f32 %v5223_v55, %v772_v59  ;;  %v4951_v59 = vld [vmem:[#allocation6 + $0x110] sm:$0xf0] }
 0x2e7   : > { %v4001_v4 = vor.u32 %v4951_v59, %v4000_v58  ;;  %v4245_v59 = vor.u32 %v5010_v48, %v4242_v49  ;;  %v4968_v49 = vld [vmem:[#allocation6 + $0x19c] sm:$0xf] }
 0x2e8   : > { %v774_v1 = vmul.f32 0.5, %v773_v63 }
 0x2ea   : > { %v775_v2 = vsub.f32 1.5, %v774_v1  ;;  %v4927_v1 = vld [vmem:[#allocation6 + $0x50] sm:$0xf0] }
 0x2eb   : > { %v3905_v11 = vor.u32 %v4927_v1, %v3904_v0  ;;  %v4041_v0 = vor.u32 %v4959_v52, %v4038_v53  ;;  %v4923_v52 = vld [vmem:[#allocation6 + $0x34] sm:$0xf]  ;;  %v3894_v53 = vld [vmem:[#allocation6 + $0x3c] sm:$0xf0] }
 0x2ec   : > { %v776_v3 = vmul.f32 %v5223_v55, %v775_v2  ;;  %v4192_v2 = vld [vmem:[#allocation6 + $0x288] sm:$0xf] }
 0x2ee   : > { %v780_v5 = vsel %vm779_vm7, %v5223_v55, %v776_v3  ;;  %v5002_v55 = vld [vmem:[#allocation6 + $0x2a8] sm:$0xf0]  ;;  %v4999_v3 = vld [vmem:[#allocation6 + $0x290] sm:$0xf0] }
 0x2ef   : > { %v781_v6 = vmul.f32 %v780_v5, %v5569_v35  ;;  %v4984_v35 = vld [vmem:[#allocation6 + $0x218] sm:$0xf0]  ;;  %v4205_v63 = vor.u32 %v5002_v55, %v4204_v54  ;;  %v4097_v5 = vor.u32 %v4975_v61, %v4096_v60  ;;  %v4193_v12 = vor.u32 %v4999_v3, %v4192_v2  ;;  %v4983_v54 = vld [vmem:[#allocation6 + $0x214] sm:$0xf]  ;;  %v4134_v55 = vld [vmem:[#allocation6 + $0x21c] sm:$0xf0] }
 0x2f0   : > { %v4133_v32 = vor.u32 %v4984_v35, %v4132_v24  ;;  %v3880_v35 = vld [vmem:[#allocation6 + $0x18] sm:$0xf]  ;;  %v4935_v60 = vld [vmem:[#allocation6 + $0x94] sm:$0xf]  ;;  %v3942_v61 = vld [vmem:[#allocation6 + $0x9c] sm:$0xf0]  ;;  %v4137_v1 = vor.u32 %v4983_v54, %v4134_v55  ;;  %v3897_v55 = vor.u32 %v4923_v52, %v3894_v53 }
 0x2f1   : > { %v789_v9 = vpack.c.bf16 %v781_v6, %v781_v6  ;;  %v3988_v6 = vld [vmem:[#allocation6 + $0xf0] sm:$0xf]  ;;  %v4956_v2 = vld [vmem:[#allocation6 + $0x13c] sm:$0xf]  ;;  %v4026_v3 = vld [vmem:[#allocation6 + $0x144] sm:$0xf0] }
 0x2f2   : > { %v4029_v13 = vor.u32 %v4956_v2, %v4026_v3  ;;  %v4995_v54 = vld [vmem:[#allocation6 + $0x274] sm:$0xf]  ;;  %v4992_v2 = vld [vmem:[#allocation6 + $0x25c] sm:$0xf]  ;;  %v4128_v52 = vld [vmem:[#allocation6 + $0x200] sm:$0xf] }
 0x2f3   : > { %v790_v10 = vunpack.c.l.bf16 %v789_v9  ;;  %v4084_v9 = vld [vmem:[#allocation6 + $0x1b0] sm:$0xf]  ;;  %v4982_v53 = vld [vmem:[#allocation6 + $0x208] sm:$0xf0] }
 0x2f5   : > { %v792_v16 = vadd.f32 %v791_v7, %v790_v10  ;;  %v4948_v7 = vld [vmem:[#allocation6 + $0xf8] sm:$0xf0] }
 0x2f6   : > { %v4972_v10 = vld [vmem:[#allocation6 + $0x1b8] sm:$0xf0]  ;;  %v3989_v17 = vor.u32 %v4948_v7, %v3988_v6  ;;  %v3945_v6 = vor.u32 %v4935_v60, %v3942_v61  ;;  %v4965_v60 = vld [vmem:[#allocation6 + $0x184] sm:$0xf] }
 0x2f7   : > { %v5580_v20 = vpack.c.bf16 %v792_v16, %v792_v16  ;;  %v4996_v16 = vld [vmem:[#allocation6 + $0x278] sm:$0xf0]  ;;  %v4085_v18 = vor.u32 %v4972_v10, %v4084_v9  ;;  %v3930_v10 = vld [vmem:[#allocation6 + $0x84] sm:$0xf0] }
 0x2f8   : > { %v4181_v24 = vor.u32 %v4996_v16, %v4180_v15  ;;  %v4932_v9 = vld [vmem:[#allocation6 + $0x7c] sm:$0xf]  ;;  %v4953_v15 = vld [vmem:[#allocation6 + $0x124] sm:$0xf]  ;;  %v4014_v16 = vld [vmem:[#allocation6 + $0x12c] sm:$0xf0] }
 0x2f9   : > { %1204 = vmatmul.bf16.vlgmr.msra.gmra.mxu3 %v5580_v20  ;;  %1217 = vmatmul.bf16.vlgmr.msrb.gmra.mxu0 %v5580_v20 }
 0x2fa   : > { %1230 = vmatmul.bf16.vlgmr.msrb.gmra.mxu1 %v5580_v20  ;;  %1243 = vmatmul.bf16.vlgmr.msrb.gmra.mxu2 %v5580_v20 }
 0x2fb   : > { %1973 = vmatpush.bf16.msrb.mxu0 %v4049_v21  ;;  %1986 = vmatpush.bf16.msrb.mxu1 %v4145_v22  ;;  %v4945_v21 = vld [vmem:[#allocation6 + $0xe0] sm:$0xf0]  ;;  %v4072_v22 = vld [vmem:[#allocation6 + $0x198] sm:$0xf] }
 0x2fc   : > { %1960 = vmatpush.bf16.msra.mxu3 %v3953_v25  ;;  %1999 = vmatpush.bf16.msrb.mxu2 %v4241_v26  ;;  %v4921_v25 = vld [vmem:[#allocation6 + $0x20] sm:$0xf0]  ;;  %v4168_v26 = vld [vmem:[#allocation6 + $0x258] sm:$0xf]  ;;  %v4073_v29 = vor.u32 %v4969_v8, %v4072_v22  ;;  %v3918_v8 = vld [vmem:[#allocation6 + $0x6c] sm:$0xf0] }
 0x2fd   : > { %v3881_v37 = vor.u32 %v4921_v25, %v3880_v35  ;;  %v4929_v22 = vld [vmem:[#allocation6 + $0x64] sm:$0xf]  ;;  %v4017_v35 = vor.u32 %v4953_v15, %v4014_v16 }
 0x2ff   : > { %1974 = vmatpush.bf16.msrb.mxu0 %v4037_v31  ;;  %1987 = vmatpush.bf16.msrb.mxu1 %v4133_v32  ;;  %v4060_v31 = vld [vmem:[#allocation6 + $0x180] sm:$0xf]  ;;  %v4966_v32 = vld [vmem:[#allocation6 + $0x188] sm:$0xf0] }
 0x300   : > { %1961 = vmatpush.bf16.msra.mxu3 %v3941_v38  ;;  %2000 = vmatpush.bf16.msrb.mxu2 %v4229_v39  ;;  %v4169_v38 = vor.u32 %v4993_v27, %v4168_v26  ;;  %v4146_v39 = vld [vmem:[#allocation6 + $0x234] sm:$0xf0]  ;;  %v4061_v46 = vor.u32 %v4966_v32, %v4060_v31  ;;  %v4950_v26 = vld [vmem:[#allocation6 + $0x10c] sm:$0xf] }
 0x301   : > { %v4002_v27 = vld [vmem:[#allocation6 + $0x114] sm:$0xf0] }
 0x302   : > { %v4005_v31 = vor.u32 %v4950_v26, %v4002_v27 }
 0x303   : > { %1975 = vmatpush.bf16.msrb.mxu0 %v4025_v44  ;;  %1988 = vmatpush.bf16.msrb.mxu1 %v4121_v45  ;;  %v4938_v44 = vld [vmem:[#allocation6 + $0xac] sm:$0xf]  ;;  %v3965_v45 = vor.u32 %v4942_v30, %v3964_v28 }
 0x304   : > { %1962 = vmatpush.bf16.msra.mxu3 %v3929_v50  ;;  %2001 = vmatpush.bf16.msrb.mxu2 %v4217_v51  ;;  %v4053_v50 = vor.u32 %v4962_v33, %v4050_v34  ;;  %v4149_v51 = vor.u32 %v4986_v36, %v4146_v39  ;;  %v3957_v58 = vor.u32 %v4938_v44, %v3954_v47  ;;  %v4974_v28 = vld [vmem:[#allocation6 + $0x1cc] sm:$0xf]  ;;  %v4947_v33 = vld [vmem:[#allocation6 + $0xf4] sm:$0xf]  ;;  %v3990_v34 = vld [vmem:[#allocation6 + $0xfc] sm:$0xf0] }
 0x305   : > { %v4971_v36 = vld [vmem:[#allocation6 + $0x1b4] sm:$0xf]  ;;  %v4194_v44 = vld [vmem:[#allocation6 + $0x294] sm:$0xf0]  ;;  %v3978_v47 = vld [vmem:[#allocation6 + $0xe4] sm:$0xf0] }
 0x307   : > { %1976 = vmatpush.bf16.msrb.mxu0 %v4013_v56  ;;  %1989 = vmatpush.bf16.msrb.mxu1 %v4109_v57  ;;  %v3869_v56 = vor.u32 %v4918_v41, %v3868_v40  ;;  %v4157_v57 = vor.u32 %v4990_v43, %v4156_v42  ;;  %v4926_v40 = vld [vmem:[#allocation6 + $0x4c] sm:$0xf]  ;;  %v3906_v41 = vld [vmem:[#allocation6 + $0x54] sm:$0xf0] }
 0x308   : > { %1963 = vmatpush.bf16.msra.mxu3 %v3917_v62  ;;  %2002 = vmatpush.bf16.msrb.mxu2 %v4205_v63  ;;  %v5007_v62 = vld [vmem:[#allocation6 + $0x2d4] sm:$0xf]  ;;  %v4230_v63 = vld [vmem:[#allocation6 + $0x2dc] sm:$0xf0]  ;;  %v4998_v42 = vld [vmem:[#allocation6 + $0x28c] sm:$0xf]  ;;  %v3909_v43 = vor.u32 %v4926_v40, %v3906_v41 }
 0x309   : > { %1256 = vmatmul.bf16.vlgmr.msrb.gmra.mxu3 %v5580_v20  ;;  %1269 = vmatmul.bf16.vlgmr.msra.gmra.mxu0 %v5580_v20  ;;  %v4233_v7 = vor.u32 %v5007_v62, %v4230_v63  ;;  %v4062_v62 = vld [vmem:[#allocation6 + $0x18c] sm:$0xf0] }
 0x30a   : > { %1282 = vmatmul.bf16.vlgmr.msra.gmra.mxu1 %v5580_v20  ;;  %1295 = vmatmul.bf16.vlgmr.msra.gmra.mxu2 %v5580_v20  ;;  %v3977_v20 = vor.u32 %v4945_v21, %v3976_v19  ;;  %v3933_v19 = vor.u32 %v4932_v9, %v3930_v10  ;;  %v4065_v63 = vor.u32 %v4965_v60, %v4062_v62  ;;  %v4989_v10 = vld [vmem:[#allocation6 + $0x244] sm:$0xf]  ;;  %v4236_v60 = vld [vmem:[#allocation6 + $0x2d8] sm:$0xf] }
 0x30b   : > { %1977 = vmatpush.bf16.msrb.mxu0 %v4001_v4  ;;  %1990 = vmatpush.bf16.msrb.mxu1 %v4097_v5  ;;  %v4980_v4 = vld [vmem:[#allocation6 + $0x1fc] sm:$0xf]  ;;  %v4122_v5 = vld [vmem:[#allocation6 + $0x204] sm:$0xf0]  ;;  %v4129_v62 = vor.u32 %v4982_v53, %v4128_v52  ;;  %v3900_v52 = vld [vmem:[#allocation6 + $0x38] sm:$0xf] }
 0x30c   : > { %1964 = vmatpush.bf16.msra.mxu3 %v3905_v11  ;;  %2003 = vmatpush.bf16.msrb.mxu2 %v4193_v12  ;;  %v5004_v11 = vld [vmem:[#allocation6 + $0x2bc] sm:$0xf]  ;;  %v4218_v12 = vld [vmem:[#allocation6 + $0x2c4] sm:$0xf0]  ;;  %v4125_v14 = vor.u32 %v4980_v4, %v4122_v5  ;;  %v4925_v53 = vld [vmem:[#allocation6 + $0x40] sm:$0xf0] }
 0x30d   : > { %v4221_v21 = vor.u32 %v5004_v11, %v4218_v12  ;;  %v4170_v4 = vld [vmem:[#allocation6 + $0x264] sm:$0xf0]  ;;  %v4158_v11 = vld [vmem:[#allocation6 + $0x24c] sm:$0xf0] }
 0x30e   : > { %v4173_v5 = vor.u32 %v4992_v2, %v4170_v4  ;;  %v4161_v12 = vor.u32 %v4989_v10, %v4158_v11  ;;  %v4979_v4 = vld [vmem:[#allocation6 + $0x1f0] sm:$0xf0] }
 0x30f   : > { %1978 = vmatpush.bf16.msrb.mxu0 %v3989_v17  ;;  %1991 = vmatpush.bf16.msrb.mxu1 %v4085_v18  ;;  %v4977_v17 = vld [vmem:[#allocation6 + $0x1e4] sm:$0xf]  ;;  %v4110_v18 = vld [vmem:[#allocation6 + $0x1ec] sm:$0xf0] }
 0x310   : > { %1965 = vmatpush.bf16.msra.mxu3 %v3893_v23  ;;  %2004 = vmatpush.bf16.msrb.mxu2 %v4181_v24  ;;  %v5001_v23 = vld [vmem:[#allocation6 + $0x2a4] sm:$0xf]  ;;  %v4206_v24 = vld [vmem:[#allocation6 + $0x2ac] sm:$0xf0]  ;;  %v4113_v25 = vor.u32 %v4977_v17, %v4110_v18 }
 0x311   : > { %v4209_v30 = vor.u32 %v5001_v23, %v4206_v24  ;;  %v4988_v23 = vld [vmem:[#allocation6 + $0x238] sm:$0xf0] }
 0x313   : > { %1979 = vmatpush.bf16.msrb.mxu0 %v3977_v20  ;;  %1992 = vmatpush.bf16.msrb.mxu1 %v4073_v29  ;;  %v4098_v20 = vld [vmem:[#allocation6 + $0x1d4] sm:$0xf0]  ;;  %v3921_v29 = vor.u32 %v4929_v22, %v3918_v8  ;;  %v4152_v8 = vld [vmem:[#allocation6 + $0x230] sm:$0xf] }
 0x314   : > { %1966 = vmatpush.bf16.msra.mxu3 %v3881_v37  ;;  %2005 = vmatpush.bf16.msrb.mxu2 %v4169_v38  ;;  %v4101_v32 = vor.u32 %v4974_v28, %v4098_v20  ;;  %v4086_v37 = vld [vmem:[#allocation6 + $0x1bc] sm:$0xf0]  ;;  %v3993_v38 = vor.u32 %v4947_v33, %v3990_v34  ;;  %v4153_v20 = vor.u32 %v4988_v23, %v4152_v8  ;;  %v4140_v33 = vld [vmem:[#allocation6 + $0x218] sm:$0xf]  ;;  %v4985_v34 = vld [vmem:[#allocation6 + $0x220] sm:$0xf0] }
 0x315   : > { %v4089_v39 = vor.u32 %v4971_v36, %v4086_v37  ;;  %v3924_v23 = vld [vmem:[#allocation6 + $0x68] sm:$0xf] }
 0x317   : > { %1980 = vmatpush.bf16.msrb.mxu0 %v3965_v45  ;;  %1993 = vmatpush.bf16.msrb.mxu1 %v4061_v46  ;;  %v4197_v45 = vor.u32 %v4998_v42, %v4194_v44  ;;  %v4944_v46 = vld [vmem:[#allocation6 + $0xdc] sm:$0xf] }
 0x318   : > { %1967 = vmatpush.bf16.msra.mxu3 %v3869_v56  ;;  %2006 = vmatpush.bf16.msrb.mxu2 %v4157_v57  ;;  %v3981_v48 = vor.u32 %v4944_v46, %v3978_v47  ;;  %v4182_v56 = vld [vmem:[#allocation6 + $0x27c] sm:$0xf0]  ;;  %v5012_v44 = vld [vmem:[#allocation6 + $0x2f8] sm:$0xf0]  ;;  %v4141_v47 = vor.u32 %v4985_v34, %v4140_v33  ;;  %v4092_v33 = vld [vmem:[#allocation6 + $0x1b8] sm:$0xf] }
 0x319   : > { %v4185_v57 = vor.u32 %v4995_v54, %v4182_v56  ;;  %v3948_v56 = vld [vmem:[#allocation6 + $0x98] sm:$0xf]  ;;  %v4973_v34 = vld [vmem:[#allocation6 + $0x1c0] sm:$0xf0] }
 0x31b   : > { %2025 = vmatpush.bf16.msra.mxu0 %v4053_v50  ;;  %2038 = vmatpush.bf16.msra.mxu1 %v4149_v51  ;;  %v4074_v50 = vld [vmem:[#allocation6 + $0x1a4] sm:$0xf0] }
 0x31c   : > { %2012 = vmatpush.bf16.msrb.mxu3 %v3957_v58  ;;  %2051 = vmatpush.bf16.msra.mxu2 %v4245_v59  ;;  %v4077_v51 = vor.u32 %v4968_v49, %v4074_v50  ;;  %v4941_v58 = vld [vmem:[#allocation6 + $0xc4] sm:$0xf]  ;;  %v3966_v59 = vld [vmem:[#allocation6 + $0xcc] sm:$0xf0]  ;;  %v4958_v49 = vld [vmem:[#allocation6 + $0x148] sm:$0xf0] }
 0x31d   : > { %v3969_v61 = vor.u32 %v4941_v58, %v3966_v59 }
 0x31f   : > { %2026 = vmatpush.bf16.msra.mxu0 %v4041_v0  ;;  %2039 = vmatpush.bf16.msra.mxu1 %v4137_v1  ;;  %v4920_v0 = vld [vmem:[#allocation6 + $0x1c] sm:$0xf]  ;;  %v3882_v1 = vld [vmem:[#allocation6 + $0x24] sm:$0xf0] }
 0x320   : > { %2013 = vmatpush.bf16.msrb.mxu3 %v3945_v6  ;;  %2052 = vmatpush.bf16.msra.mxu2 %v4233_v7  ;;  %v3885_v3 = vor.u32 %v4920_v0, %v3882_v1  ;;  %v4917_v6 = vld [vmem:[#allocation6 + $0x4] sm:$0xf]  ;;  %v3870_v7 = vld [vmem:[#allocation6 + $0xc] sm:$0xf0]  ;;  %v4955_v0 = vld [vmem:[#allocation6 + $0x130] sm:$0xf0] }
 0x321   : > { %v3873_v9 = vor.u32 %v4917_v6, %v3870_v7  ;;  %v3936_v7 = vld [vmem:[#allocation6 + $0x80] sm:$0xf] }
 0x323   : > { %2027 = vmatpush.bf16.msra.mxu0 %v4029_v13  ;;  %2040 = vmatpush.bf16.msra.mxu1 %v4125_v14  ;;  %v5593_v13 = vld [vmem:[%s5684_s8] sm:$0xff] }
 0x324   : > { %2014 = vmatpush.bf16.msrb.mxu3 %v3933_v19  ;;  %2053 = vmatpush.bf16.msra.mxu2 %v4221_v21  ;;  %v861_v14 = vperm.slane %v5593_v13, 1  ;;  %v862_v15 = vperm.slane %v5593_v13, 2  ;;  %v4056_v19 = vld [vmem:[#allocation6 + $0x170] sm:$0xf]  ;;  %v4964_v21 = vld [vmem:[#allocation6 + $0x178] sm:$0xf0] }
 0x325   : > { %v863_v26 = vperm.slane %v5593_v13, 3  ;;  %v4057_v27 = vor.u32 %v4964_v21, %v4056_v19  ;;  %v4104_v21 = vld [vmem:[#allocation6 + $0x1d0] sm:$0xf] }
 0x327   : > { %2028 = vmatpush.bf16.msra.mxu0 %v4017_v35  ;;  %2041 = vmatpush.bf16.msra.mxu1 %v4113_v25  ;;  %v860_v35 = vperm.slane %v5593_v13, 0 }
 0x328   : > { %2015 = vmatpush.bf16.msrb.mxu3 %v3921_v29  ;;  %2054 = vmatpush.bf16.msra.mxu2 %v4209_v30  ;;  %v4044_v29 = vld [vmem:[#allocation6 + $0x158] sm:$0xf]  ;;  %v4961_v30 = vld [vmem:[#allocation6 + $0x160] sm:$0xf0] }
 0x329   : > { %v4045_v42 = vor.u32 %v4961_v30, %v4044_v29  ;;  %v4949_v29 = vld [vmem:[#allocation6 + $0x100] sm:$0xf0] }
 0x32b   : > { %2029 = vmatpush.bf16.msra.mxu0 %v4005_v31  ;;  %2042 = vmatpush.bf16.msra.mxu1 %v4101_v32 }
 0x32c   : > { %2016 = vmatpush.bf16.msrb.mxu3 %v3909_v43  ;;  %2055 = vmatpush.bf16.msra.mxu2 %v4197_v45  ;;  %v4248_v43 = vld [vmem:[#allocation6 + $0x2f0] sm:$0xf] }
 0x32f   : > { %2030 = vmatpush.bf16.msra.mxu0 %v3993_v38  ;;  %2043 = vmatpush.bf16.msra.mxu1 %v4089_v39  ;;  %v3960_v38 = vld [vmem:[#allocation6 + $0xb0] sm:$0xf]  ;;  %v4940_v39 = vld [vmem:[#allocation6 + $0xb8] sm:$0xf0] }
 0x330   : > { %2017 = vmatpush.bf16.msrb.mxu3 %v3897_v55  ;;  %2056 = vmatpush.bf16.msra.mxu2 %v4185_v57  ;;  %v4249_v55 = vor.u32 %v5012_v44, %v4248_v43  ;;  %v4937_v57 = vld [vmem:[#allocation6 + $0xa0] sm:$0xf0]  ;;  %v5000_v43 = vld [vmem:[#allocation6 + $0x298] sm:$0xf0] }
 0x331   : > { %v3949_v2 = vor.u32 %v4937_v57, %v3948_v56  ;;  %v4188_v56 = vld [vmem:[#allocation6 + $0x278] sm:$0xf]  ;;  %v4997_v57 = vld [vmem:[#allocation6 + $0x280] sm:$0xf0] }
 0x333   : > { %2031 = vmatpush.bf16.msra.mxu0 %v3981_v48  ;;  %2044 = vmatpush.bf16.msra.mxu1 %v4077_v51  ;;  %v4032_v48 = vld [vmem:[#allocation6 + $0x140] sm:$0xf]  ;;  %v3961_v51 = vor.u32 %v4940_v39, %v3960_v38  ;;  %v3912_v38 = vld [vmem:[#allocation6 + $0x50] sm:$0xf]  ;;  %v4928_v39 = vld [vmem:[#allocation6 + $0x58] sm:$0xf0] }
 0x334   : > { %2018 = vmatpush.bf16.msrb.mxu3 %v3885_v3  ;;  %2057 = vmatpush.bf16.msra.mxu2 %v4173_v5  ;;  %v4033_v59 = vor.u32 %v4958_v49, %v4032_v48  ;;  %v4116_v3 = vld [vmem:[#allocation6 + $0x1e8] sm:$0xf]  ;;  %v3913_v48 = vor.u32 %v4928_v39, %v3912_v38  ;;  %v4080_v49 = vld [vmem:[#allocation6 + $0x1a0] sm:$0xf] }
 0x337   : > { %2032 = vmatpush.bf16.msra.mxu0 %v3969_v61  ;;  %2045 = vmatpush.bf16.msra.mxu1 %v4065_v63  ;;  %v5009_v61 = vld [vmem:[#allocation6 + $0x2e0] sm:$0xf0]  ;;  %v4020_v63 = vld [vmem:[#allocation6 + $0x128] sm:$0xf] }
 0x338   : > { %2019 = vmatpush.bf16.msrb.mxu3 %v3873_v9  ;;  %2058 = vmatpush.bf16.msra.mxu2 %v4161_v12  ;;  %v4237_v6 = vor.u32 %v5009_v61, %v4236_v60  ;;  %v4934_v9 = vld [vmem:[#allocation6 + $0x88] sm:$0xf0]  ;;  %v4021_v11 = vor.u32 %v4955_v0, %v4020_v63  ;;  %v4224_v12 = vld [vmem:[#allocation6 + $0x2c0] sm:$0xf]  ;;  %v4943_v61 = vld [vmem:[#allocation6 + $0xd0] sm:$0xf0] }
 0x339   : > { %v3937_v19 = vor.u32 %v4934_v9, %v3936_v7  ;;  %v4967_v63 = vld [vmem:[#allocation6 + $0x190] sm:$0xf0]  ;;  %v3888_v9 = vld [vmem:[#allocation6 + $0x20] sm:$0xf] }
 0x33a   : > { %v5083_v7 = vld [vmem:[#allocation6 + $0x530] sm:$0xf0] }
 0x376   : > { %v1218_v16 = vpop.f32.mrf.mxu0 }
 0x377   : > { %v1219_v17 = vadd.f32 %v1218_v16, %v861_v14  ;;  %v1231_v18 = vpop.f32.mrf.mxu1  ;;  %v5006_v14 = vld [vmem:[#allocation6 + $0x2c8] sm:$0xf0]  ;;  %v4117_v16 = vor.u32 %v4979_v4, %v4116_v3  ;;  %v5059_v3 = vld [vmem:[#allocation6 + $0x470] sm:$0xf0]  ;;  %v4529_v4 = vld [vmem:[#allocation6 + $0x528] sm:$0xf] }
 0x378   : > { %v1232_v22 = vadd.f32 %v1231_v18, %v862_v15  ;;  %v4952_v18 = vld [vmem:[#allocation6 + $0x118] sm:$0xf0]  ;;  %v4225_v8 = vor.u32 %v5006_v14, %v4224_v12  ;;  %v4176_v14 = vld [vmem:[#allocation6 + $0x260] sm:$0xf] }
 0x379   : > { %v1301_v24 = vmax.f32 %v1219_v17, 0.0  ;;  %v4008_v17 = vld [vmem:[#allocation6 + $0x110] sm:$0xf] }
 0x37a   : > { %v1302_v25 = vmax.f32 %v1232_v22, 0.0  ;;  %v4976_v22 = vld [vmem:[#allocation6 + $0x1d8] sm:$0xf0] }
 0x37b   : > { %v5599_v28 = vpack.c.bf16 %v1301_v24, %v1301_v24  ;;  %v4931_v24 = vld [vmem:[#allocation6 + $0x70] sm:$0xf0] }
 0x37c   : > { %v5601_v31 = vpack.c.bf16 %v1302_v25, %v1302_v25  ;;  %v1205_v32 = vpop.f32.mrf.mxu3  ;;  %v4212_v25 = vld [vmem:[#allocation6 + $0x2a8] sm:$0xf] }
 0x37d   : > { %v1206_v36 = vadd.f32 %v1205_v32, %v860_v35  ;;  %v1244_v37 = vpop.f32.mrf.mxu2  ;;  %1981 = vmatmul.bf16.vlgmr.msrb.gmra.mxu0 %v5599_v28  ;;  %v4009_v35 = vor.u32 %v4952_v18, %v4008_v17  ;;  %v3925_v32 = vor.u32 %v4931_v24, %v3924_v23  ;;  %v4517_v23 = vld [vmem:[#allocation6 + $0x510] sm:$0xf]  ;;  %v5080_v24 = vld [vmem:[#allocation6 + $0x518] sm:$0xf0] }
 0x37e   : > { %v1245_v40 = vadd.f32 %v1244_v37, %v863_v26  ;;  %1994 = vmatmul.bf16.vlgmr.msrb.gmra.mxu1 %v5601_v31  ;;  %2077 = vmatpush.bf16.msrb.mxu0 %v4057_v27  ;;  %v1220_v41 = vpop.f32.mrf.mxu0  ;;  %v5003_v26 = vld [vmem:[#allocation6 + $0x2b0] sm:$0xf0]  ;;  %v4105_v27 = vor.u32 %v4976_v22, %v4104_v21  ;;  %v4530_v21 = vor.u32 %v5083_v7, %v4529_v4  ;;  %v4481_v4 = vld [vmem:[#allocation6 + $0x4c8] sm:$0xf]  ;;  %v4301_v7 = vld [vmem:[#allocation6 + $0x360] sm:$0xf] }
 0x37f   : > { %v1300_v45 = vmax.f32 %v1206_v36, 0.0  ;;  %2090 = vmatpush.bf16.msrb.mxu1 %v4153_v20  ;;  %v1233_v46 = vpop.f32.mrf.mxu1  ;;  %v3996_v20 = vld [vmem:[#allocation6 + $0xf8] sm:$0xf]  ;;  %v4213_v37 = vor.u32 %v5003_v26, %v4212_v25  ;;  %v3876_v25 = vld [vmem:[#allocation6 + $0x8] sm:$0xf]  ;;  %v4518_v38 = vor.u32 %v5080_v24, %v4517_v23 }
 0x380   : > { %v1303_v50 = vmax.f32 %v1245_v40, 0.0  ;;  %v3997_v41 = vor.u32 %v4949_v29, %v3996_v20  ;;  %v3984_v46 = vld [vmem:[#allocation6 + $0xe0] sm:$0xf]  ;;  %v4919_v26 = vld [vmem:[#allocation6 + $0x10] sm:$0xf0] }
 0x381   : > { %v5605_v54 = vpack.c.bf16 %v1300_v45, %v1300_v45  ;;  %v4093_v45 = vor.u32 %v4973_v34, %v4092_v33  ;;  %v4991_v20 = vld [vmem:[#allocation6 + $0x250] sm:$0xf0]  ;;  %v4337_v29 = vld [vmem:[#allocation6 + $0x3a8] sm:$0xf]  ;;  %v3877_v39 = vor.u32 %v4919_v26, %v3876_v25  ;;  %v865_v25 = vperm.slane %v5593_v13, 5 }
 0x382   : > { %v5607_v58 = vpack.c.bf16 %v1303_v50, %v1303_v50  ;;  %2078 = vmatpush.bf16.msrb.mxu0 %v4045_v42  ;;  %v4200_v42 = vld [vmem:[#allocation6 + $0x290] sm:$0xf]  ;;  %v4970_v50 = vld [vmem:[#allocation6 + $0x1a8] sm:$0xf0]  ;;  %v4625_v34 = vld [vmem:[#allocation6 + $0x5e8] sm:$0xf] }
 0x383   : > { %2091 = vmatpush.bf16.msrb.mxu1 %v4141_v47  ;;  %1968 = vmatmul.bf16.vlgmr.msra.gmra.mxu3 %v5605_v54  ;;  %v4946_v47 = vld [vmem:[#allocation6 + $0xe8] sm:$0xf0]  ;;  %v4081_v60 = vor.u32 %v4970_v50, %v4080_v49  ;;  %v4613_v50 = vld [vmem:[#allocation6 + $0x5d0] sm:$0xf]  ;;  %v4577_v24 = vld [vmem:[#allocation6 + $0x588] sm:$0xf] }
 0x384   : > { %2007 = vmatmul.bf16.vlgmr.msrb.gmra.mxu2 %v5607_v58  ;;  %2064 = vmatpush.bf16.msra.mxu3 %v3961_v51  ;;  %v1207_v1 = vpop.f32.mrf.mxu3  ;;  %v4201_v51 = vor.u32 %v5000_v43, %v4200_v42  ;;  %v866_v26 = vperm.slane %v5593_v13, 6 }
 0x385   : > { %2103 = vmatpush.bf16.msrb.mxu2 %v4249_v55  ;;  %v1246_v5 = vpop.f32.mrf.mxu2  ;;  %v3985_v55 = vor.u32 %v4946_v47, %v3984_v46  ;;  %v3901_v1 = vor.u32 %v4925_v53, %v3900_v52  ;;  %v4325_v47 = vld [vmem:[#allocation6 + $0x390] sm:$0xf]  ;;  %v4397_v53 = vld [vmem:[#allocation6 + $0x420] sm:$0xf] }
 0x386   : > { %2079 = vmatpush.bf16.msrb.mxu0 %v4033_v59  ;;  %v5611_v10 = vpop.f32.mrf.mxu0  ;;  %v3972_v59 = vld [vmem:[#allocation6 + $0xc8] sm:$0xf] }
 0x387   : > { %2092 = vmatpush.bf16.msrb.mxu1 %v4129_v62  ;;  %v5613_v15 = vpop.f32.mrf.mxu1  ;;  %v4068_v62 = vld [vmem:[#allocation6 + $0x188] sm:$0xf]  ;;  %v3973_v12 = vor.u32 %v4943_v61, %v3972_v59 }
 0x388   : > { %2065 = vmatpush.bf16.msra.mxu3 %v3949_v2  ;;  %v4433_v2 = vld [vmem:[#allocation6 + $0x468] sm:$0xf]  ;;  %v4069_v17 = vor.u32 %v4967_v63, %v4068_v62  ;;  %v4601_v62 = vld [vmem:[#allocation6 + $0x5b8] sm:$0xf]  ;;  %v5101_v63 = vld [vmem:[#allocation6 + $0x5c0] sm:$0xf0] }
 0x389   : > { %2104 = vmatpush.bf16.msrb.mxu2 %v4237_v6  ;;  %v4189_v6 = vor.u32 %v4997_v57, %v4188_v56  ;;  %v4434_v18 = vor.u32 %v5059_v3, %v4433_v2  ;;  %v4493_v56 = vld [vmem:[#allocation6 + $0x4e0] sm:$0xf]  ;;  %v5074_v57 = vld [vmem:[#allocation6 + $0x4e8] sm:$0xf0]  ;;  %v5047_v2 = vld [vmem:[#allocation6 + $0x410] sm:$0xf0] }
 0x38a   : > { %2080 = vmatpush.bf16.msrb.mxu0 %v4021_v11  ;;  %v4922_v11 = vld [vmem:[#allocation6 + $0x28] sm:$0xf0] }
 0x38b   : > { %2093 = vmatpush.bf16.msrb.mxu1 %v4117_v16  ;;  %v4994_v16 = vld [vmem:[#allocation6 + $0x268] sm:$0xf0]  ;;  %v3889_v22 = vor.u32 %v4922_v11, %v3888_v9 }
 0x38c   : > { %2066 = vmatpush.bf16.msra.mxu3 %v3937_v19  ;;  %v5615_v30 = vpop.f32.mrf.mxu3  ;;  %v4421_v19 = vld [vmem:[#allocation6 + $0x450] sm:$0xf]  ;;  %v5026_v9 = vld [vmem:[#allocation6 + $0x368] sm:$0xf0] }
 0x38d   : > { %2105 = vmatpush.bf16.msrb.mxu2 %v4225_v8  ;;  %v5617_v36 = vpop.f32.mrf.mxu2  ;;  %2033 = vmatmul.bf16.vlgmr.msra.gmra.mxu0 %v5599_v28  ;;  %v5056_v8 = vld [vmem:[#allocation6 + $0x458] sm:$0xf0] }
 0x38e   : > { %2046 = vmatmul.bf16.vlgmr.msra.gmra.mxu1 %v5601_v31  ;;  %2081 = vmatpush.bf16.msrb.mxu0 %v4009_v35  ;;  %v1272_v40 = vpop.f32.mrf.mxu0  ;;  %v4177_v35 = vor.u32 %v4994_v16, %v4176_v14  ;;  %v4422_v33 = vor.u32 %v5056_v8, %v4421_v19  ;;  %v4373_v16 = vld [vmem:[#allocation6 + $0x3f0] sm:$0xf]  ;;  %v5068_v19 = vld [vmem:[#allocation6 + $0x4b8] sm:$0xf0]  ;;  %v5023_v8 = vld [vmem:[#allocation6 + $0x350] sm:$0xf0] }
 0x38f   : > { %2094 = vmatpush.bf16.msrb.mxu1 %v4105_v27  ;;  %v1285_v44 = vpop.f32.mrf.mxu1  ;;  %v4164_v27 = vld [vmem:[#allocation6 + $0x248] sm:$0xf]  ;;  %v4409_v40 = vld [vmem:[#allocation6 + $0x438] sm:$0xf] }
 0x390   : > { %2067 = vmatpush.bf16.msra.mxu3 %v3925_v32  ;;  %v5035_v32 = vld [vmem:[#allocation6 + $0x3b0] sm:$0xf0]  ;;  %v4165_v42 = vor.u32 %v4991_v20, %v4164_v27  ;;  %v4505_v44 = vld [vmem:[#allocation6 + $0x4f8] sm:$0xf] }
 0x391   : > { %2106 = vmatpush.bf16.msrb.mxu2 %v4213_v37  ;;  %v5107_v37 = vld [vmem:[#allocation6 + $0x5f0] sm:$0xf0]  ;;  %v4338_v43 = vor.u32 %v5035_v32, %v4337_v29  ;;  %v4361_v20 = vld [vmem:[#allocation6 + $0x3d8] sm:$0xf]  ;;  %v5041_v29 = vld [vmem:[#allocation6 + $0x3e0] sm:$0xf0] }
 0x392   : > { %2082 = vmatpush.bf16.msrb.mxu0 %v3997_v41  ;;  %v5053_v41 = vld [vmem:[#allocation6 + $0x440] sm:$0xf0]  ;;  %v4626_v46 = vor.u32 %v5107_v37, %v4625_v34  ;;  %v864_v37 = vperm.slane %v5593_v13, 4 }
 0x393   : > { %2095 = vmatpush.bf16.msrb.mxu1 %v4093_v45  ;;  %2020 = vmatmul.bf16.vlgmr.msrb.gmra.mxu3 %v5605_v54  ;;  %v5077_v45 = vld [vmem:[#allocation6 + $0x500] sm:$0xf0]  ;;  %v4410_v49 = vor.u32 %v5053_v41, %v4409_v40  ;;  %v5020_v40 = vld [vmem:[#allocation6 + $0x338] sm:$0xf0]  ;;  %v4362_v41 = vor.u32 %v5041_v29, %v4361_v20 }
 0x394   : > { %2059 = vmatmul.bf16.vlgmr.msra.gmra.mxu2 %v5607_v58  ;;  %2068 = vmatpush.bf16.msra.mxu3 %v3913_v48  ;;  %v1259_v0 = vpop.f32.mrf.mxu3  ;;  %v5032_v48 = vld [vmem:[#allocation6 + $0x398] sm:$0xf0]  ;;  %v4506_v52 = vor.u32 %v5077_v45, %v4505_v44  ;;  %v5065_v34 = vld [vmem:[#allocation6 + $0x4a0] sm:$0xf0]  ;;  %v4349_v44 = vld [vmem:[#allocation6 + $0x3c0] sm:$0xf]  ;;  %v1271_v45 = vadd.f32 %v5611_v10, %v865_v25 }
 0x395   : > { %2107 = vmatpush.bf16.msrb.mxu2 %v4201_v51  ;;  %v1298_v5 = vpop.f32.mrf.mxu2  ;;  %v5104_v51 = vld [vmem:[#allocation6 + $0x5d8] sm:$0xf0]  ;;  %v4494_v0 = vor.u32 %v5074_v57, %v4493_v56  ;;  %v4531_v56 = vld [vmem:[#allocation6 + $0x534] sm:$0xf0] }
 0x396   : > { %2083 = vmatpush.bf16.msrb.mxu0 %v3985_v55  ;;  %v5050_v55 = vld [vmem:[#allocation6 + $0x428] sm:$0xf0]  ;;  %v4614_v59 = vor.u32 %v5104_v51, %v4613_v50  ;;  %v5071_v5 = vld [vmem:[#allocation6 + $0x4d0] sm:$0xf0]  ;;  %v4265_v57 = vld [vmem:[#allocation6 + $0x318] sm:$0xf] }
 0x397   : > { %2096 = vmatpush.bf16.msrb.mxu1 %v4081_v60  ;;  %v5029_v60 = vld [vmem:[#allocation6 + $0x380] sm:$0xf0]  ;;  %v4398_v61 = vor.u32 %v5050_v55, %v4397_v53  ;;  %v4482_v14 = vor.u32 %v5071_v5, %v4481_v4  ;;  %v5062_v50 = vld [vmem:[#allocation6 + $0x488] sm:$0xf0]  ;;  %v4435_v53 = vld [vmem:[#allocation6 + $0x474] sm:$0xf0] }
 0x398   : > { %2069 = vmatpush.bf16.msra.mxu3 %v3901_v1  ;;  %v4385_v1 = vld [vmem:[#allocation6 + $0x408] sm:$0xf]  ;;  %v5082_v55 = vld [vmem:[#allocation6 + $0x52c] sm:$0xf]  ;;  %v4423_v4 = vld [vmem:[#allocation6 + $0x45c] sm:$0xf0] }
 0x399   : > { %2108 = vmatpush.bf16.msrb.mxu2 %v4189_v6  ;;  %v4602_v6 = vor.u32 %v5101_v63, %v4601_v62  ;;  %v4386_v11 = vor.u32 %v5047_v2, %v4385_v1  ;;  %v5055_v1 = vld [vmem:[#allocation6 + $0x454] sm:$0xf]  ;;  %v4534_v2 = vor.u32 %v5082_v55, %v4531_v56  ;;  %v5046_v55 = vld [vmem:[#allocation6 + $0x40c] sm:$0xf] }
 0x39a   : > { %2084 = vmatpush.bf16.msrb.mxu0 %v3973_v12  ;;  %v5098_v12 = vld [vmem:[#allocation6 + $0x5a8] sm:$0xf0]  ;;  %v5079_v5 = vld [vmem:[#allocation6 + $0x514] sm:$0xf] }
 0x39b   : > { %2097 = vmatpush.bf16.msrb.mxu1 %v4069_v17  ;;  %v5044_v17 = vld [vmem:[#allocation6 + $0x3f8] sm:$0xf0] }
 0x39c   : > { %2070 = vmatpush.bf16.msra.mxu3 %v3889_v22  ;;  %v4289_v22 = vld [vmem:[#allocation6 + $0x348] sm:$0xf]  ;;  %v4374_v23 = vor.u32 %v5044_v17, %v4373_v16  ;;  %v5034_v16 = vld [vmem:[#allocation6 + $0x3ac] sm:$0xf]  ;;  %v4339_v17 = vld [vmem:[#allocation6 + $0x3b4] sm:$0xf0] }
 0x39d   : > { %2109 = vmatpush.bf16.msrb.mxu2 %v4177_v35  ;;  %2085 = vmatmul.bf16.vlgmr.msrb.gmra.mxu0 %v5599_v28  ;;  %v4326_v28 = vor.u32 %v5032_v48, %v4325_v47  ;;  %v5095_v35 = vld [vmem:[#allocation6 + $0x590] sm:$0xf0]  ;;  %v4290_v32 = vor.u32 %v5023_v8, %v4289_v22  ;;  %v5038_v48 = vld [vmem:[#allocation6 + $0x3c8] sm:$0xf0]  ;;  %v4342_v25 = vor.u32 %v5034_v16, %v4339_v17  ;;  %v5064_v17 = vld [vmem:[#allocation6 + $0x49c] sm:$0xf] }
 0x39e   : > { %2786 = vmatpush.bf16.msra.mxu0 %v4434_v18  ;;  %2098 = vmatmul.bf16.vlgmr.msrb.gmra.mxu1 %v5601_v31  ;;  %v4313_v31 = vld [vmem:[#allocation6 + $0x378] sm:$0xf]  ;;  %v4469_v18 = vld [vmem:[#allocation6 + $0x4b0] sm:$0xf]  ;;  %v4350_v10 = vor.u32 %v5038_v48, %v4349_v44  ;;  %v5073_v44 = vld [vmem:[#allocation6 + $0x4e4] sm:$0xf] }
 0x39f   : > { %2799 = vmatpush.bf16.msra.mxu1 %v4530_v21  ;;  %v4314_v3 = vor.u32 %v5029_v60, %v4313_v31  ;;  %v4470_v27 = vor.u32 %v5068_v19, %v4469_v18  ;;  %v867_v31 = vperm.slane %v5593_v13, 7  ;;  %v5089_v60 = vld [vmem:[#allocation6 + $0x560] sm:$0xf0]  ;;  %v4426_v18 = vor.u32 %v5055_v1, %v4423_v4  ;;  %v5106_v19 = vld [vmem:[#allocation6 + $0x5ec] sm:$0xf] }
 0x3a0   : > { %2071 = vmatpush.bf16.msra.mxu3 %v3877_v39  ;;  %v4277_v39 = vld [vmem:[#allocation6 + $0x330] sm:$0xf]  ;;  %v5028_v48 = vld [vmem:[#allocation6 + $0x37c] sm:$0xf]  ;;  %v4375_v1 = vld [vmem:[#allocation6 + $0x3fc] sm:$0xf0] }
 0x3a1   : > { %2110 = vmatpush.bf16.msrb.mxu2 %v4165_v42  ;;  %v4565_v42 = vld [vmem:[#allocation6 + $0x570] sm:$0xf]  ;;  %v4278_v51 = vor.u32 %v5020_v40, %v4277_v39  ;;  %v5049_v40 = vld [vmem:[#allocation6 + $0x424] sm:$0xf]  ;;  %v4471_v4 = vld [vmem:[#allocation6 + $0x4bc] sm:$0xf0] }
 0x3a2   : > { %2787 = vmatpush.bf16.msra.mxu0 %v4422_v33  ;;  %v4457_v33 = vld [vmem:[#allocation6 + $0x498] sm:$0xf] }
 0x3a3   : > { %2800 = vmatpush.bf16.msra.mxu1 %v4518_v38  ;;  %2072 = vmatmul.bf16.vlgmr.msra.gmra.mxu3 %v5605_v54  ;;  %v4589_v54 = vld [vmem:[#allocation6 + $0x5a0] sm:$0xf]  ;;  %v4578_v38 = vor.u32 %v5095_v35, %v4577_v24  ;;  %v4458_v47 = vor.u32 %v5065_v34, %v4457_v33  ;;  %v4411_v24 = vld [vmem:[#allocation6 + $0x444] sm:$0xf0] }
 0x3a4   : > { %2773 = vmatpush.bf16.msrb.mxu3 %v4338_v43  ;;  %2111 = vmatmul.bf16.vlgmr.msrb.gmra.mxu2 %v5607_v58  ;;  %v4302_v58 = vor.u32 %v5026_v9, %v4301_v7  ;;  %v4590_v21 = vor.u32 %v5098_v12, %v4589_v54  ;;  %v5092_v43 = vld [vmem:[#allocation6 + $0x578] sm:$0xf0]  ;;  %v1258_v7 = vadd.f32 %v5615_v30, %v864_v37  ;;  %v4253_v9 = vld [vmem:[#allocation6 + $0x300] sm:$0xf]  ;;  %v5103_v37 = vld [vmem:[#allocation6 + $0x5d4] sm:$0xf] }
 0x3a5   : > { %2812 = vmatpush.bf16.msra.mxu2 %v4626_v46  ;;  %v1284_v46 = vadd.f32 %v5613_v15, %v866_v26  ;;  %v4553_v15 = vld [vmem:[#allocation6 + $0x558] sm:$0xf]  ;;  %v4541_v54 = vld [vmem:[#allocation6 + $0x540] sm:$0xf]  ;;  %v1297_v12 = vadd.f32 %v5617_v36, %v867_v31  ;;  %v5076_v26 = vld [vmem:[#allocation6 + $0x4fc] sm:$0xf] }
 0x3a6   : > { %2788 = vmatpush.bf16.msra.mxu0 %v4410_v49  ;;  %v4445_v49 = vld [vmem:[#allocation6 + $0x480] sm:$0xf]  ;;  %v4554_v13 = vor.u32 %v5089_v60, %v4553_v15  ;;  %v1304_v36 = vmax.f32 %v1258_v7, 0.0  ;;  %v4303_v15 = vld [vmem:[#allocation6 + $0x36c] sm:$0xf0] }
 0x3a7   : > { %2801 = vmatpush.bf16.msra.mxu1 %v4506_v52  ;;  %v5058_v52 = vld [vmem:[#allocation6 + $0x46c] sm:$0xf]  ;;  %v1306_v62 = vmax.f32 %v1284_v46, 0.0  ;;  %v4446_v63 = vor.u32 %v5062_v50, %v4445_v49  ;;  %v1307_v20 = vmax.f32 %v1297_v12, 0.0  ;;  %v4327_v33 = vld [vmem:[#allocation6 + $0x39c] sm:$0xf0] }
 0x3a8   : > { %2774 = vmatpush.bf16.msrb.mxu3 %v4326_v28  ;;  %v4566_v28 = vor.u32 %v5092_v43, %v4565_v42  ;;  %v5641_v42 = vpack.c.bf16 %v1304_v36, %v1304_v36  ;;  %v4315_v49 = vld [vmem:[#allocation6 + $0x384] sm:$0xf0]  ;;  %v4291_v7 = vld [vmem:[#allocation6 + $0x354] sm:$0xf0]  ;;  %v5040_v12 = vld [vmem:[#allocation6 + $0x3dc] sm:$0xf] }
 0x3a9   : > { %2813 = vmatpush.bf16.msra.mxu2 %v4614_v59  ;;  %v5017_v59 = vld [vmem:[#allocation6 + $0x320] sm:$0xf0]  ;;  %v5637_v22 = vpack.c.bf16 %v1306_v62, %v1306_v62  ;;  %v5643_v46 = vpack.c.bf16 %v1307_v20, %v1307_v20  ;;  %v4318_v56 = vor.u32 %v5028_v48, %v4315_v49  ;;  %v4591_v62 = vld [vmem:[#allocation6 + $0x5ac] sm:$0xf0] }
 0x3aa   : > { %2789 = vmatpush.bf16.msra.mxu0 %v4398_v61  ;;  %v1305_v61 = vmax.f32 %v1271_v45, 0.0  ;;  %v4495_v45 = vld [vmem:[#allocation6 + $0x4ec] sm:$0xf0]  ;;  %v5037_v36 = vld [vmem:[#allocation6 + $0x3c4] sm:$0xf] }
 0x3ab   : > { %2802 = vmatpush.bf16.msra.mxu1 %v4494_v0  ;;  %v4438_v0 = vor.u32 %v5058_v52, %v4435_v53  ;;  %v4603_v52 = vld [vmem:[#allocation6 + $0x5c4] sm:$0xf0]  ;;  %v4498_v53 = vor.u32 %v5073_v44, %v4495_v45 }
 0x3ac   : > { %2775 = vmatpush.bf16.msrb.mxu3 %v4314_v3  ;;  %v4266_v3 = vor.u32 %v5017_v59, %v4265_v57  ;;  %v5070_v57 = vld [vmem:[#allocation6 + $0x4cc] sm:$0xf]  ;;  %v4483_v59 = vld [vmem:[#allocation6 + $0x4d4] sm:$0xf0] }
 0x3ad   : > { %2814 = vmatpush.bf16.msra.mxu2 %v4602_v6  ;;  %v4519_v6 = vld [vmem:[#allocation6 + $0x51c] sm:$0xf0] }
 0x3ae   : > { %2790 = vmatpush.bf16.msra.mxu0 %v4386_v11  ;;  %v5014_v11 = vld [vmem:[#allocation6 + $0x308] sm:$0xf0]  ;;  %v4522_v30 = vor.u32 %v5079_v5, %v4519_v6 }
 0x3af   : > { %2803 = vmatpush.bf16.msra.mxu1 %v4482_v14  ;;  %v5086_v14 = vld [vmem:[#allocation6 + $0x548] sm:$0xf0]  ;;  %v4254_v8 = vor.u32 %v5014_v11, %v4253_v9  ;;  %v4579_v11 = vld [vmem:[#allocation6 + $0x594] sm:$0xf0] }
 0x3b0   : > { %2776 = vmatpush.bf16.msrb.mxu3 %v4302_v58  ;;  %v5635_v58 = vpack.c.bf16 %v1305_v61, %v1305_v61  ;;  %v4542_v35 = vor.u32 %v5086_v14, %v4541_v54  ;;  %v5097_v61 = vld [vmem:[#allocation6 + $0x5a4] sm:$0xf]  ;;  %v5022_v6 = vld [vmem:[#allocation6 + $0x34c] sm:$0xf]  ;;  %v4363_v14 = vld [vmem:[#allocation6 + $0x3e4] sm:$0xf0] }
 0x3b1   : > { %2815 = vmatpush.bf16.msra.mxu2 %v4590_v21  ;;  %v4627_v21 = vld [vmem:[#allocation6 + $0x5f4] sm:$0xf0]  ;;  %v4594_v5 = vor.u32 %v5097_v61, %v4591_v62  ;;  %v5094_v9 = vld [vmem:[#allocation6 + $0x58c] sm:$0xf]  ;;  %v4294_v16 = vor.u32 %v5022_v6, %v4291_v7  ;;  %v5033_v7 = vld [vmem:[#allocation6 + $0x3a0] sm:$0xf0] }
 0x3b2   : > { %2791 = vmatpush.bf16.msra.mxu0 %v4374_v23  ;;  %v5052_v23 = vld [vmem:[#allocation6 + $0x43c] sm:$0xf]  ;;  %v4630_v29 = vor.u32 %v5106_v19, %v4627_v21  ;;  %v4582_v19 = vor.u32 %v5094_v9, %v4579_v11  ;;  %v5019_v21 = vld [vmem:[#allocation6 + $0x334] sm:$0xf]  ;;  %v4333_v6 = vld [vmem:[#allocation6 + $0x398] sm:$0xf] }
 0x3b3   : > { %2804 = vmatpush.bf16.msra.mxu1 %v4470_v27  ;;  %v4507_v27 = vld [vmem:[#allocation6 + $0x504] sm:$0xf0]  ;;  %v4414_v34 = vor.u32 %v5052_v23, %v4411_v24  ;;  %v5091_v23 = vld [vmem:[#allocation6 + $0x574] sm:$0xf]  ;;  %v4567_v24 = vld [vmem:[#allocation6 + $0x57c] sm:$0xf0] }
 0x3b4   : > { %2777 = vmatpush.bf16.msrb.mxu3 %v4290_v32  ;;  %v5031_v32 = vld [vmem:[#allocation6 + $0x394] sm:$0xf]  ;;  %v4510_v39 = vor.u32 %v5076_v26, %v4507_v27  ;;  %v5061_v26 = vld [vmem:[#allocation6 + $0x484] sm:$0xf]  ;;  %v4447_v27 = vld [vmem:[#allocation6 + $0x48c] sm:$0xf0] }
 0x3b5   : > { %2816 = vmatpush.bf16.msra.mxu2 %v4578_v38  ;;  %v4615_v38 = vld [vmem:[#allocation6 + $0x5dc] sm:$0xf0]  ;;  %v4330_v43 = vor.u32 %v5031_v32, %v4327_v33  ;;  %v5060_v32 = vld [vmem:[#allocation6 + $0x478] sm:$0xf0]  ;;  %v4537_v33 = vld [vmem:[#allocation6 + $0x530] sm:$0xf]  ;;  %v4450_v44 = vor.u32 %v5061_v26, %v4447_v27 }
 0x3b6   : > { %2792 = vmatpush.bf16.msra.mxu0 %v4362_v41  ;;  %v4399_v41 = vld [vmem:[#allocation6 + $0x42c] sm:$0xf0]  ;;  %v4621_v9 = vld [vmem:[#allocation6 + $0x5d8] sm:$0xf]  ;;  %v5105_v11 = vld [vmem:[#allocation6 + $0x5e0] sm:$0xf0] }
 0x3b7   : > { %2805 = vmatpush.bf16.msra.mxu1 %v4458_v47  ;;  %v4618_v47 = vor.u32 %v5103_v37, %v4615_v38  ;;  %v4402_v50 = vor.u32 %v5049_v40, %v4399_v41  ;;  %v5084_v37 = vld [vmem:[#allocation6 + $0x538] sm:$0xf0]  ;;  %v4489_v27 = vld [vmem:[#allocation6 + $0x4d0] sm:$0xf] }
 0x3b8   : > { %2778 = vmatpush.bf16.msrb.mxu3 %v4278_v51  ;;  %v5100_v51 = vld [vmem:[#allocation6 + $0x5bc] sm:$0xf]  ;;  %v4538_v48 = vor.u32 %v5084_v37, %v4537_v33  ;;  %v5027_v33 = vld [vmem:[#allocation6 + $0x370] sm:$0xf0]  ;;  %v4597_v37 = vld [vmem:[#allocation6 + $0x5a8] sm:$0xf] }
 0x3b9   : > { %2817 = vmatpush.bf16.msra.mxu2 %v4566_v28  ;;  %v4387_v28 = vld [vmem:[#allocation6 + $0x414] sm:$0xf0]  ;;  %v4606_v31 = vor.u32 %v5100_v51, %v4603_v52  ;;  %v5016_v38 = vld [vmem:[#allocation6 + $0x31c] sm:$0xf]  ;;  %v5081_v52 = vld [vmem:[#allocation6 + $0x520] sm:$0xf0] }
 0x3ba   : > { %2793 = vmatpush.bf16.msra.mxu0 %v4350_v10  ;;  %v5025_v10 = vld [vmem:[#allocation6 + $0x364] sm:$0xf]  ;;  %v4390_v60 = vor.u32 %v5046_v55, %v4387_v28  ;;  %v5088_v41 = vld [vmem:[#allocation6 + $0x55c] sm:$0xf]  ;;  %v4525_v51 = vld [vmem:[#allocation6 + $0x518] sm:$0xf] }
 0x3bb   : > { %2806 = vmatpush.bf16.msra.mxu1 %v4446_v63  ;;  %v4486_v63 = vor.u32 %v5070_v57, %v4483_v59  ;;  %v5013_v55 = vld [vmem:[#allocation6 + $0x304] sm:$0xf]  ;;  %v4255_v28 = vld [vmem:[#allocation6 + $0x30c] sm:$0xf0]  ;;  %v4526_v61 = vor.u32 %v5081_v52, %v4525_v51  ;;  %v5096_v52 = vld [vmem:[#allocation6 + $0x598] sm:$0xf0] }
 0x3bc   : > { %2779 = vmatpush.bf16.msrb.mxu3 %v4266_v3  ;;  %v5067_v3 = vld [vmem:[#allocation6 + $0x4b4] sm:$0xf]  ;;  %v4543_v57 = vld [vmem:[#allocation6 + $0x54c] sm:$0xf0]  ;;  %v4258_v62 = vor.u32 %v5013_v55, %v4255_v28  ;;  %v4369_v55 = vld [vmem:[#allocation6 + $0x3e0] sm:$0xf] }
 0x3bd   : > { %2818 = vmatpush.bf16.msra.mxu2 %v4554_v13  ;;  %2794 = vmatmul.bf16.vlgmr.msra.gmra.mxu0 %v5635_v58  ;;  %v4474_v54 = vor.u32 %v5067_v3, %v4471_v4  ;;  %v4345_v59 = vld [vmem:[#allocation6 + $0x3b0] sm:$0xf]  ;;  %v4513_v3 = vld [vmem:[#allocation6 + $0x500] sm:$0xf]  ;;  %v5078_v4 = vld [vmem:[#allocation6 + $0x508] sm:$0xf0] }
 0x3be   : > { %2838 = vmatpush.bf16.msrb.mxu0 %v4438_v0  ;;  %2807 = vmatmul.bf16.vlgmr.msra.gmra.mxu1 %v5637_v22  ;;  %v5043_v0 = vld [vmem:[#allocation6 + $0x3f4] sm:$0xf]  ;;  %v4585_v51 = vld [vmem:[#allocation6 + $0x590] sm:$0xf]  ;;  %v5042_v28 = vld [vmem:[#allocation6 + $0x3e8] sm:$0xf0] }
 0x3bf   : > { %2851 = vmatpush.bf16.msrb.mxu1 %v4534_v2  ;;  %v4306_v2 = vor.u32 %v5025_v10, %v4303_v15  ;;  %v4378_v13 = vor.u32 %v5043_v0, %v4375_v1  ;;  %v4633_v15 = vld [vmem:[#allocation6 + $0x5f0] sm:$0xf]  ;;  %v5054_v0 = vld [vmem:[#allocation6 + $0x448] sm:$0xf0] }
 0x3c0   : > { %2780 = vmatpush.bf16.msrb.mxu3 %v4254_v8  ;;  %v4366_v8 = vor.u32 %v5040_v12, %v4363_v14  ;;  %v4405_v12 = vld [vmem:[#allocation6 + $0x428] sm:$0xf]  ;;  %v5051_v14 = vld [vmem:[#allocation6 + $0x430] sm:$0xf0] }
 0x3c1   : > { %2819 = vmatpush.bf16.msra.mxu2 %v4542_v35 }
 0x3c2   : > { %2839 = vmatpush.bf16.msrb.mxu0 %v4426_v18  ;;  %v4459_v18 = vld [vmem:[#allocation6 + $0x4a4] sm:$0xf0] }
 0x3c3   : > { %2852 = vmatpush.bf16.msrb.mxu1 %v4522_v30  ;;  %2781 = vmatmul.bf16.vlgmr.msrb.gmra.mxu3 %v5641_v42  ;;  %v4279_v30 = vld [vmem:[#allocation6 + $0x33c] sm:$0xf0]  ;;  %v4462_v35 = vor.u32 %v5064_v17, %v4459_v18  ;;  %v4501_v17 = vld [vmem:[#allocation6 + $0x4e8] sm:$0xf]  ;;  %v5075_v18 = vld [vmem:[#allocation6 + $0x4f0] sm:$0xf0] }
 0x3c4   : > { %2825 = vmatpush.bf16.msra.mxu3 %v4342_v25  ;;  %2820 = vmatmul.bf16.vlgmr.msra.gmra.mxu2 %v5643_v46  ;;  %v4351_v25 = vld [vmem:[#allocation6 + $0x3cc] sm:$0xf0]  ;;  %v4282_v20 = vor.u32 %v5019_v21, %v4279_v30  ;;  %v4321_v21 = vld [vmem:[#allocation6 + $0x380] sm:$0xf]  ;;  %v5030_v30 = vld [vmem:[#allocation6 + $0x388] sm:$0xf0] }
 0x3c5   : > { %2864 = vmatpush.bf16.msrb.mxu2 %v4630_v29  ;;  %v4441_v29 = vld [vmem:[#allocation6 + $0x470] sm:$0xf]  ;;  %v4354_v40 = vor.u32 %v5037_v36, %v4351_v25  ;;  %v4502_v36 = vor.u32 %v5075_v18, %v4501_v17  ;;  %v5048_v25 = vld [vmem:[#allocation6 + $0x418] sm:$0xf0]  ;;  %v4322_v26 = vor.u32 %v5030_v30, %v4321_v21  ;;  %v4261_v17 = vld [vmem:[#allocation6 + $0x308] sm:$0xf] }
 0x3c6   : > { %2840 = vmatpush.bf16.msrb.mxu0 %v4414_v34  ;;  %v4570_v34 = vor.u32 %v5091_v23, %v4567_v24  ;;  %v4442_v45 = vor.u32 %v5060_v32, %v4441_v29  ;;  %v4609_v23 = vld [vmem:[#allocation6 + $0x5c0] sm:$0xf]  ;;  %v5102_v24 = vld [vmem:[#allocation6 + $0x5c8] sm:$0xf0]  ;;  %v4309_v32 = vld [vmem:[#allocation6 + $0x368] sm:$0xf] }
 0x3c7   : > { %2853 = vmatpush.bf16.msrb.mxu1 %v4510_v39  ;;  %v4267_v39 = vld [vmem:[#allocation6 + $0x324] sm:$0xf0]  ;;  %v4610_v29 = vor.u32 %v5102_v24, %v4609_v23  ;;  %v5015_v18 = vld [vmem:[#allocation6 + $0x310] sm:$0xf0]  ;;  %v5116_v24 = vld [vmem:[#allocation7 + $0x38] sm:$0xff] }
 0x3c8   : > { %2826 = vmatpush.bf16.msra.mxu3 %v4330_v43  ;;  %v4555_v43 = vld [vmem:[#allocation6 + $0x564] sm:$0xf0]  ;;  %v4270_v49 = vor.u32 %v5016_v38, %v4267_v39  ;;  %v5099_v38 = vld [vmem:[#allocation6 + $0x5b0] sm:$0xf0] }
 0x3c9   : > { %2865 = vmatpush.bf16.msrb.mxu2 %v4618_v47  ;;  %v4429_v47 = vld [vmem:[#allocation6 + $0x458] sm:$0xf]  ;;  %v5087_v21 = vld [vmem:[#allocation6 + $0x550] sm:$0xf0] }
 0x3ca   : > { %2841 = vmatpush.bf16.msrb.mxu0 %v4402_v50  ;;  %v5057_v50 = vld [vmem:[#allocation6 + $0x460] sm:$0xf0]  ;;  %v5123_v30 = vld [vmem:[#allocation7 + $0x70] sm:$0xff] }
 0x3cb   : > { %2854 = vmatpush.bf16.msrb.mxu1 %v4498_v53  ;;  %v4558_v53 = vor.u32 %v5088_v41, %v4555_v43  ;;  %v4430_v10 = vor.u32 %v5057_v50, %v4429_v47  ;;  %v5045_v41 = vld [vmem:[#allocation6 + $0x400] sm:$0xf0]  ;;  %v4310_v43 = vor.u32 %v5027_v33, %v4309_v32  ;;  %v4598_v47 = vor.u32 %v5099_v38, %v4597_v37  ;;  %v5120_v32 = vld [vmem:[#allocation7 + $0x58] sm:$0xff]  ;;  %v5119_v38 = vld [vmem:[#allocation7 + $0x50] sm:$0xff] }
 0x3cc   : > { %2827 = vmatpush.bf16.msra.mxu3 %v4318_v56  ;;  %v5085_v56 = vld [vmem:[#allocation6 + $0x544] sm:$0xf] }
 0x3cd   : > { %2866 = vmatpush.bf16.msrb.mxu2 %v4606_v31  ;;  %v5036_v31 = vld [vmem:[#allocation6 + $0x3b8] sm:$0xf0]  ;;  %v4546_v1 = vor.u32 %v5085_v56, %v4543_v57  ;;  %v4465_v57 = vld [vmem:[#allocation6 + $0x4a0] sm:$0xf] }
 0x3ce   : > { %2842 = vmatpush.bf16.msrb.mxu0 %v4390_v60  ;;  %v5108_v60 = vld [vmem:[#allocation6 + $0x5f8] sm:$0xf0]  ;;  %v5113_v33 = vld [vmem:[#allocation7 + $0x20] sm:$0xff] }
 0x3cf   : > { %2855 = vmatpush.bf16.msrb.mxu1 %v4486_v63  ;;  %v4417_v63 = vld [vmem:[#allocation6 + $0x440] sm:$0xf] }
 0x3d0   : > { %2828 = vmatpush.bf16.msra.mxu3 %v4306_v2  ;;  %v4346_v2 = vor.u32 %v5036_v31, %v4345_v59  ;;  %v5066_v59 = vld [vmem:[#allocation6 + $0x4a8] sm:$0xf0]  ;;  %v4586_v31 = vor.u32 %v5096_v52, %v4585_v51  ;;  %v5117_v52 = vld [vmem:[#allocation7 + $0x40] sm:$0xff] }
 0x3d1   : > { %2867 = vmatpush.bf16.msrb.mxu2 %v4594_v5  ;;  %v4634_v5 = vor.u32 %v5108_v60, %v4633_v15  ;;  %v5021_v15 = vld [vmem:[#allocation6 + $0x340] sm:$0xf0]  ;;  %v4370_v60 = vor.u32 %v5042_v28, %v4369_v55  ;;  %v5110_v28 = vld [vmem:[#allocation7 + $0x8] sm:$0xff] }
 0x3d2   : > { %2843 = vmatpush.bf16.msrb.mxu0 %v4378_v13  ;;  %v4418_v13 = vor.u32 %v5054_v0, %v4417_v63  ;;  %v4466_v63 = vor.u32 %v5066_v59, %v4465_v57  ;;  %v4357_v0 = vld [vmem:[#allocation6 + $0x3c8] sm:$0xf] }
 0x3d3   : > { %2856 = vmatpush.bf16.msrb.mxu1 %v4474_v54  ;;  %v4514_v54 = vor.u32 %v5078_v4, %v4513_v3  ;;  %v4453_v3 = vld [vmem:[#allocation6 + $0x488] sm:$0xf]  ;;  %v5063_v4 = vld [vmem:[#allocation6 + $0x490] sm:$0xf0] }
 0x3d4   : > { %2829 = vmatpush.bf16.msra.mxu3 %v4294_v16  ;;  %v4334_v16 = vor.u32 %v5033_v7, %v4333_v6  ;;  %v4273_v6 = vld [vmem:[#allocation6 + $0x320] sm:$0xf]  ;;  %v5018_v7 = vld [vmem:[#allocation6 + $0x328] sm:$0xf0] }
 0x3d5   : > { %2868 = vmatpush.bf16.msrb.mxu2 %v4582_v19  ;;  %v4622_v19 = vor.u32 %v5105_v11, %v4621_v9  ;;  %v4561_v9 = vld [vmem:[#allocation6 + $0x560] sm:$0xf]  ;;  %v5090_v11 = vld [vmem:[#allocation6 + $0x568] sm:$0xf0] }
 0x3d6   : > { %2844 = vmatpush.bf16.msrb.mxu0 %v4366_v8  ;;  %v4406_v8 = vor.u32 %v5051_v14, %v4405_v12  ;;  %v5124_v12 = vld [vmem:[#allocation7 + $0x78] sm:$0xff]  ;;  %v4274_v14 = vor.u32 %v5018_v7, %v4273_v6  ;;  %v5138_v6 = vld [vmem:[#allocation7 + $0xe8] sm:$0xff] }
 0x3d7   : > { %2857 = vmatpush.bf16.msrb.mxu1 %v4462_v35  ;;  %v4393_v35 = vld [vmem:[#allocation6 + $0x410] sm:$0xf] }
 0x3d8   : > { %2830 = vmatpush.bf16.msra.mxu3 %v4282_v20  ;;  %v5072_v20 = vld [vmem:[#allocation6 + $0x4d8] sm:$0xf0] }
 0x3d9   : > { %2869 = vmatpush.bf16.msrb.mxu2 %v4570_v34  ;;  %v4394_v34 = vor.u32 %v5048_v25, %v4393_v35  ;;  %v4490_v39 = vor.u32 %v5072_v20, %v4489_v27  ;;  %v5122_v35 = vld [vmem:[#allocation7 + $0x68] sm:$0xff]  ;;  %v5115_v25 = vld [vmem:[#allocation7 + $0x30] sm:$0xff]  ;;  %v5121_v20 = vld [vmem:[#allocation7 + $0x60] sm:$0xff] }
 0x3da   : > { %2845 = vmatpush.bf16.msrb.mxu0 %v4354_v40  ;;  %v4381_v40 = vld [vmem:[#allocation6 + $0x3f8] sm:$0xf] }
 0x3db   : > { %2858 = vmatpush.bf16.msrb.mxu1 %v4450_v44  ;;  %v4477_v44 = vld [vmem:[#allocation6 + $0x4b8] sm:$0xf]  ;;  %v4382_v50 = vor.u32 %v5045_v41, %v4381_v40 }
 0x3dc   : > { %2831 = vmatpush.bf16.msra.mxu3 %v4270_v49  ;;  %v5024_v49 = vld [vmem:[#allocation6 + $0x358] sm:$0xf0] }
 0x3dd   : > { %2870 = vmatpush.bf16.msrb.mxu2 %v4558_v53  ;;  %2846 = vmatmul.bf16.vlgmr.msrb.gmra.mxu0 %v5635_v58  ;;  %v5128_v40 = vld [vmem:[#allocation7 + $0x98] sm:$0xff] }
 0x3de   : > { %2890 = vmatpush.bf16.msra.mxu0 %v4442_v45  ;;  %2859 = vmatmul.bf16.vlgmr.msrb.gmra.mxu1 %v5637_v22  ;;  %v5069_v45 = vld [vmem:[#allocation6 + $0x4c0] sm:$0xf0]  ;;  %v5112_v41 = vld [vmem:[#allocation7 + $0x18] sm:$0xff] }
 0x3df   : > { %2903 = vmatpush.bf16.msra.mxu1 %v4538_v48  ;;  %v4297_v48 = vld [vmem:[#allocation6 + $0x350] sm:$0xf]  ;;  %v4478_v53 = vor.u32 %v5069_v45, %v4477_v44  ;;  %v5118_v44 = vld [vmem:[#allocation7 + $0x48] sm:$0xff] }
 0x3e0   : > { %2832 = vmatpush.bf16.msra.mxu3 %v4258_v62  ;;  %v4298_v56 = vor.u32 %v5024_v49, %v4297_v48  ;;  %v5093_v62 = vld [vmem:[#allocation6 + $0x580] sm:$0xf0]  ;;  %v5111_v48 = vld [vmem:[#allocation7 + $0x10] sm:$0xff] }
 0x3e1   : > { %2871 = vmatpush.bf16.msrb.mxu2 %v4546_v1  ;;  %v5039_v1 = vld [vmem:[#allocation6 + $0x3d0] sm:$0xf0] }
 0x3e2   : > { %2891 = vmatpush.bf16.msra.mxu0 %v4430_v10  ;;  %v4285_v10 = vld [vmem:[#allocation6 + $0x338] sm:$0xf]  ;;  %v5127_v49 = vld [vmem:[#allocation7 + $0x90] sm:$0xff] }
 0x3e3   : > { %2904 = vmatpush.bf16.msra.mxu1 %v4526_v61  ;;  %2833 = vmatmul.bf16.vlgmr.msra.gmra.mxu3 %v5641_v42  ;;  %v4573_v61 = vld [vmem:[#allocation6 + $0x578] sm:$0xf] }
 0x3e4   : > { %2877 = vmatpush.bf16.msrb.mxu3 %v4346_v2  ;;  %2872 = vmatmul.bf16.vlgmr.msrb.gmra.mxu2 %v5643_v46  ;;  %v4286_v2 = vor.u32 %v5021_v15, %v4285_v10  ;;  %v5109_v10 = vld [vmem:[#allocation7] sm:$0xff] }
 0x3e5   : > { %2916 = vmatpush.bf16.msra.mxu2 %v4634_v5  ;;  %v4574_v5 = vor.u32 %v5093_v62, %v4573_v61  ;;  %v5125_v15 = vld [vmem:[#allocation7 + $0x80] sm:$0xff] }
 0x3e6   : > { %2892 = vmatpush.bf16.msra.mxu0 %v4418_v13  ;;  %v4358_v13 = vor.u32 %v5039_v1, %v4357_v0  ;;  %v5139_v1 = vld [vmem:[#allocation7 + $0xf0] sm:$0xff] }
 0x3e7   : > { %2905 = vmatpush.bf16.msra.mxu1 %v4514_v54  ;;  %v4454_v54 = vor.u32 %v5063_v4, %v4453_v3 }
 0x3e8   : > { %2878 = vmatpush.bf16.msrb.mxu3 %v4334_v16  ;;  %v4562_v16 = vor.u32 %v5090_v11, %v4561_v9  ;;  %v5137_v9 = vld [vmem:[#allocation7 + $0xe0] sm:$0xff] }
 0x3e9   : > { %2917 = vmatpush.bf16.msra.mxu2 %v4622_v19  ;;  %v4549_v19 = vld [vmem:[#allocation6 + $0x548] sm:$0xf] }
 0x3ea   : > { %2893 = vmatpush.bf16.msra.mxu0 %v4406_v8  ;;  %v4262_v8 = vor.u32 %v5015_v18, %v4261_v17  ;;  %v4550_v23 = vor.u32 %v5087_v21, %v4549_v19  ;;  %v5136_v18 = vld [vmem:[#allocation7 + $0xd8] sm:$0xff] }
 0x3eb   : > { %2906 = vmatpush.bf16.msra.mxu1 %v4502_v36  ;;  %v5132_v36 = vld [vmem:[#allocation7 + $0xb8] sm:$0xff] }
 0x3ec   : > { %2879 = vmatpush.bf16.msrb.mxu3 %v4322_v26  ;;  %v5131_v26 = vld [vmem:[#allocation7 + $0xb0] sm:$0xff] }
 0x3ed   : > { %2918 = vmatpush.bf16.msra.mxu2 %v4610_v29  ;;  %v5114_v29 = vld [vmem:[#allocation7 + $0x28] sm:$0xff] }
 0x3ee   : > { %2894 = vmatpush.bf16.msra.mxu0 %v4394_v34  ;;  %v5658_v34 = vld [vmem:[%s5686_s10] sm:$0x7] }
 0x3ef   : > { %2907 = vmatpush.bf16.msra.mxu1 %v4490_v39  ;;  %v1442_v39 = vperm.slane %v5658_v34, 0  ;;  %v1443_v0 = vperm.slane %v5658_v34, 1 }
 0x3f0   : > { %2880 = vmatpush.bf16.msrb.mxu3 %v4310_v43 }
 0x3f1   : > { %2919 = vmatpush.bf16.msra.mxu2 %v4598_v47 }
 0x3f2   : > { %2895 = vmatpush.bf16.msra.mxu0 %v4382_v50 }
 0x3f3   : > { %2908 = vmatpush.bf16.msra.mxu1 %v4478_v53 }
 0x3f4   : > { %2881 = vmatpush.bf16.msrb.mxu3 %v4298_v56  ;;  %v5126_v56 = vld [vmem:[#allocation7 + $0x88] sm:$0xff] }
 0x3f5   : > { %2920 = vmatpush.bf16.msra.mxu2 %v4586_v31 }
 0x3f6   : > { %2896 = vmatpush.bf16.msra.mxu0 %v4370_v60  ;;  %v5140_v60 = vld [vmem:[#allocation7 + $0xf8] sm:$0xff] }
 0x3f7   : > { %2909 = vmatpush.bf16.msra.mxu1 %v4466_v63 }
 0x3f8   : > { %2882 = vmatpush.bf16.msrb.mxu3 %v4286_v2 }
 0x3f9   : > { %2921 = vmatpush.bf16.msra.mxu2 %v4574_v5 }
 0x3fa   : > { %2897 = vmatpush.bf16.msra.mxu0 %v4358_v13  ;;  %v1982_v27 = vpop.f32.mrf.mxu0 }
 0x3fb   : > { %2910 = vmatpush.bf16.msra.mxu1 %v4454_v54 }
 0x3fc   : > { %2883 = vmatpush.bf16.msrb.mxu3 %v4274_v14 }
 0x3fd   : > { %2922 = vmatpush.bf16.msra.mxu2 %v4562_v16  ;;  %2898 = vmatmul.bf16.vlgmr.msra.gmra.mxu0 %v5635_v58  ;;  %v1995_v58 = vpop.f32.mrf.mxu1 }
 0x3fe   : > { %3339 = vmatpush.bf16.msrb.mxu0 %v5124_v12  ;;  %2911 = vmatmul.bf16.vlgmr.msra.gmra.mxu1 %v5637_v22  ;;  %v5130_v22 = vld [vmem:[#allocation7 + $0xa8] sm:$0xff] }
 0x3ff   : > { %3352 = vmatpush.bf16.msrb.mxu1 %v5132_v36 }
 0x400   : > { %2884 = vmatpush.bf16.msrb.mxu3 %v4262_v8  ;;  %v1444_v8 = vperm.slane %v5658_v34, 2  ;;  %v5146_v34 = vld [vmem:[#allocation7 + $0x128] sm:$0xff] }
 0x401   : > { %2923 = vmatpush.bf16.msra.mxu2 %v4550_v23  ;;  %v5135_v23 = vld [vmem:[#allocation7 + $0xd0] sm:$0xff] }
 0x402   : > { %3340 = vmatpush.bf16.msrb.mxu0 %v5123_v30  ;;  %v1984_v37 = vpop.f32.mrf.mxu0 }
 0x403   : > { %2885 = vmatmul.bf16.vlgmr.msrb.gmra.mxu3 %v5641_v42  ;;  %3353 = vmatpush.bf16.msrb.mxu1 %v5131_v26  ;;  %v5129_v42 = vld [vmem:[#allocation7 + $0xa0] sm:$0xff] }
 0x404   : > { %3326 = vmatpush.bf16.msra.mxu3 %v5116_v24  ;;  %2924 = vmatmul.bf16.vlgmr.msra.gmra.mxu2 %v5643_v46 }
 0x405   : > { %v1997_v46 = vpop.f32.mrf.mxu1  ;;  %3365 = vmatpush.bf16.msrb.mxu2 %v5140_v60  ;;  %v5154_v60 = vld [vmem:[#allocation7 + $0x168] sm:$0xff] }
 0x406   : > { %3341 = vmatpush.bf16.msrb.mxu0 %v5122_v35  ;;  %v1969_v43 = vpop.f32.mrf.mxu3  ;;  %v5145_v46 = vld [vmem:[#allocation7 + $0x120] sm:$0xff] }
 0x407   : > { %3354 = vmatpush.bf16.msrb.mxu1 %v5130_v22  ;;  %v1970_v45 = vadd.f32 %v1969_v43, %v1442_v39  ;;  %v2008_v47 = vpop.f32.mrf.mxu2 }
 0x408   : > { %3327 = vmatpush.bf16.msra.mxu3 %v5115_v25  ;;  %v5134_v25 = vld [vmem:[#allocation7 + $0xc8] sm:$0xff] }
 0x409   : > { %v1983_v50 = vadd.f32 %v1982_v27, %v1970_v45  ;;  %3366 = vmatpush.bf16.msrb.mxu2 %v5139_v1 }
 0x40a   : > { %3342 = vmatpush.bf16.msrb.mxu0 %v5121_v20  ;;  %v2034_v51 = vpop.f32.mrf.mxu0  ;;  %v5133_v20 = vld [vmem:[#allocation7 + $0xc0] sm:$0xff] }
 0x40b   : > { %3355 = vmatpush.bf16.msrb.mxu1 %v5129_v42  ;;  %v1996_v53 = vadd.f32 %v1995_v58, %v1983_v50  ;;  %v5147_v42 = vld [vmem:[#allocation7 + $0x130] sm:$0xff] }
 0x40c   : > { %3328 = vmatpush.bf16.msra.mxu3 %v5114_v29  ;;  %v5148_v29 = vld [vmem:[#allocation7 + $0x138] sm:$0xff] }
 0x40d   : > { %v2047_v55 = vpop.f32.mrf.mxu1  ;;  %v2009_v57 = vadd.f32 %v2008_v47, %v1996_v53  ;;  %3367 = vmatpush.bf16.msrb.mxu2 %v5138_v6  ;;  %v5143_v47 = vld [vmem:[#allocation7 + $0x110] sm:$0xff] }
 0x40e   : > { %3343 = vmatpush.bf16.msrb.mxu0 %v5120_v32  ;;  %v1971_v59 = vpop.f32.mrf.mxu3 }
 0x40f   : > { %3356 = vmatpush.bf16.msrb.mxu1 %v5128_v40  ;;  %v2010_v31 = vpop.f32.mrf.mxu2  ;;  %v2116_v61 = vmax.f32 %v2009_v57, 0.0  ;;  %v4250_v40 = vld [vmem:[%s5686_s10 + $0x3] sm:$0x7] }
 0x410   : > { %3329 = vmatpush.bf16.msra.mxu3 %v5113_v33  ;;  %v2255_v45 = vperm.slane %v4250_v40, 0 }
 0x411   : > { %v2932_v2 = vpack.c.bf16 %v2116_v61, %v2116_v61  ;;  %3368 = vmatpush.bf16.msrb.mxu2 %v5137_v9 }
 0x412   : > { %3344 = vmatpush.bf16.msrb.mxu0 %v5119_v38  ;;  %v2036_v62 = vpop.f32.mrf.mxu0 }
 0x413   : > { %3357 = vmatpush.bf16.msrb.mxu1 %v5127_v49  ;;  %v5153_v62 = vld [vmem:[#allocation7 + $0x160] sm:$0xff] }
 0x414   : > { %3330 = vmatpush.bf16.msra.mxu3 %v5112_v41  ;;  %v5144_v41 = vld [vmem:[#allocation7 + $0x118] sm:$0xff] }
 0x415   : > { %v2049_v63 = vpop.f32.mrf.mxu1  ;;  %3369 = vmatpush.bf16.msrb.mxu2 %v5136_v18 }
 0x416   : > { %3345 = vmatpush.bf16.msrb.mxu0 %v5118_v44  ;;  %v2021_v3 = vpop.f32.mrf.mxu3 }
 0x417   : > { %3358 = vmatpush.bf16.msrb.mxu1 %v5126_v56  ;;  %v2022_v4 = vadd.f32 %v2021_v3, %v1443_v0  ;;  %v2060_v5 = vpop.f32.mrf.mxu2  ;;  %v5156_v56 = vld [vmem:[#allocation7 + $0x178] sm:$0xff]  ;;  %v2256_v3 = vperm.slane %v4250_v40, 1 }
 0x418   : > { %3331 = vmatpush.bf16.msra.mxu3 %v5111_v48  ;;  %v5152_v0 = vld [vmem:[#allocation7 + $0x158] sm:$0xff] }
 0x419   : > { %v2035_v7 = vadd.f32 %v2034_v51, %v2022_v4  ;;  %3370 = vmatpush.bf16.msrb.mxu2 %v5135_v23  ;;  %v5142_v51 = vld [vmem:[#allocation7 + $0x108] sm:$0xff]  ;;  %v5151_v4 = vld [vmem:[#allocation7 + $0x150] sm:$0xff]  ;;  %v2257_v23 = vperm.slane %v4250_v40, 2 }
 0x41a   : > { %3346 = vmatpush.bf16.msrb.mxu0 %v5117_v52  ;;  %v2086_v13 = vpop.f32.mrf.mxu0 }
 0x41b   : > { %3359 = vmatpush.bf16.msrb.mxu1 %v5125_v15  ;;  %v2048_v11 = vadd.f32 %v2047_v55, %v2035_v7  ;;  %v5141_v55 = vld [vmem:[#allocation7 + $0x100] sm:$0xff] }
 0x41c   : > { %3332 = vmatpush.bf16.msra.mxu3 %v5110_v28 }
 0x41d   : > { %v2099_v54 = vpop.f32.mrf.mxu1  ;;  %v2061_v12 = vadd.f32 %v2060_v5, %v2048_v11  ;;  %3371 = vmatpush.bf16.msrb.mxu2 %v5134_v25 }
 0x41e   : > { %v2023_v14 = vpop.f32.mrf.mxu3  ;;  %3391 = vmatpush.bf16.msra.mxu0 %v5156_v56 }
 0x41f   : > { %v2117_v16 = vmax.f32 %v2061_v12, 0.0  ;;  %v2062_v17 = vpop.f32.mrf.mxu2 }
 0x420   : > { %3333 = vmatpush.bf16.msra.mxu3 %v5109_v10  ;;  %v5155_v10 = vld [vmem:[#allocation7 + $0x170] sm:$0xff] }
 0x421   : > { %v2933_v19 = vpack.c.bf16 %v2117_v16, %v2117_v16  ;;  %3372 = vmatpush.bf16.msrb.mxu2 %v5133_v20 }
 0x422   : > { %v2088_v21 = vpop.f32.mrf.mxu0  ;;  %3392 = vmatpush.bf16.msra.mxu0 %v5155_v10 }
 0x423   : > { %3334 = vmatmul.bf16.vlgmr.msra.gmra.mxu3 %v2932_v2  ;;  %3347 = vmatmul.bf16.vlgmr.msrb.gmra.mxu0 %v2933_v19 }
 0x424   : > { %3378 = vmatpush.bf16.msrb.mxu3 %v5148_v29 }
 0x425   : > { %v2101_v30 = vpop.f32.mrf.mxu1 }
 0x426   : > { %v2073_v24 = vpop.f32.mrf.mxu3  ;;  %3393 = vmatpush.bf16.msra.mxu0 %v5154_v60 }
 0x427   : > { %v2074_v36 = vadd.f32 %v2073_v24, %v1444_v8  ;;  %v2112_v35 = vpop.f32.mrf.mxu2 }
 0x428   : > { %3379 = vmatpush.bf16.msrb.mxu3 %v5147_v42 }
 0x429   : > { %v2087_v26 = vadd.f32 %v2086_v13, %v2074_v36  ;;  %v5150_v13 = vld [vmem:[#allocation7 + $0x148] sm:$0xff] }
 0x42a   : > { %3394 = vmatpush.bf16.msra.mxu0 %v5153_v62 }
 0x42b   : > { %v2100_v27 = vadd.f32 %v2099_v54, %v2087_v26  ;;  %v5149_v54 = vld [vmem:[#allocation7 + $0x140] sm:$0xff] }
 0x42c   : > { %3380 = vmatpush.bf16.msrb.mxu3 %v5146_v34 }
 0x42d   : > { %v2113_v58 = vadd.f32 %v2112_v35, %v2100_v27 }
 0x42e   : > { %v2075_v22 = vpop.f32.mrf.mxu3  ;;  %3395 = vmatpush.bf16.msra.mxu0 %v5152_v0 }
 0x42f   : > { %v2118_v32 = vmax.f32 %v2113_v58, 0.0  ;;  %v2114_v33 = vpop.f32.mrf.mxu2 }
 0x430   : > { %3381 = vmatpush.bf16.msrb.mxu3 %v5145_v46  ;;  %v5215_v33 = vld [vmem:[%s5688_s12] ss:$0 sm:$0xff] }
 0x431   : > { %v2934_v37 = vpack.c.bf16 %v2118_v32, %v2118_v32 }
 0x432   : > { %3396 = vmatpush.bf16.msra.mxu0 %v5151_v4 }
 0x433   : > { %3360 = vmatmul.bf16.vlgmr.msrb.gmra.mxu1 %v2934_v37 }
 0x434   : > { %3382 = vmatpush.bf16.msrb.mxu3 %v5144_v41 }
 0x436   : > { %3397 = vmatpush.bf16.msra.mxu0 %v5150_v13 }
 0x438   : > { %3383 = vmatpush.bf16.msrb.mxu3 %v5143_v47 }
 0x43a   : > { %v2795_v38 = vpop.f32.mrf.mxu0  ;;  %3398 = vmatpush.bf16.msra.mxu0 %v5149_v54 }
 0x43b   : > { %v2808_v39 = vpop.f32.mrf.mxu1 }
 0x43c   : > { %3384 = vmatpush.bf16.msrb.mxu3 %v5142_v51 }
 0x440   : > { %3385 = vmatpush.bf16.msrb.mxu3 %v5141_v55 }
 0x442   : > { %v2797_v43 = vpop.f32.mrf.mxu0 }
 0x443   : > { %v2810_v44 = vpop.f32.mrf.mxu1 }
 0x446   : > { %v2782_v48 = vpop.f32.mrf.mxu3 }
 0x447   : > { %v2783_v49 = vadd.f32 %v2782_v48, %v2255_v45  ;;  %v2821_v50 = vpop.f32.mrf.mxu2 }
 0x449   : > { %v2796_v52 = vadd.f32 %v2795_v38, %v2783_v49 }
 0x44b   : > { %v2809_v53 = vadd.f32 %v2808_v39, %v2796_v52 }
 0x44d   : > { %v2822_v28 = vadd.f32 %v2821_v50, %v2809_v53 }
 0x44e   : > { %v2784_v57 = vpop.f32.mrf.mxu3 }
 0x44f   : > { %v2929_v59 = vmax.f32 %v2822_v28, 0.0  ;;  %v2823_v31 = vpop.f32.mrf.mxu2 }
 0x451   : > { %v2935_v15 = vpack.c.bf16 %v2929_v59, %v2929_v59 }
 0x453   : > { %3373 = vmatmul.bf16.vlgmr.msrb.gmra.mxu2 %v2935_v15 }
 0x45a   : > { %v2847_v61 = vpop.f32.mrf.mxu0 }
 0x45b   : > { %v2860_v63 = vpop.f32.mrf.mxu1 }
 0x462   : > { %v2849_v1 = vpop.f32.mrf.mxu0 }
 0x463   : > { %v2862_v2 = vpop.f32.mrf.mxu1 }
 0x466   : > { %v2834_v5 = vpop.f32.mrf.mxu3 }
 0x467   : > { %v2835_v6 = vadd.f32 %v2834_v5, %v2256_v3  ;;  %v2873_v7 = vpop.f32.mrf.mxu2 }
 0x469   : > { %v2848_v9 = vadd.f32 %v2847_v61, %v2835_v6 }
 0x46b   : > { %v2861_v11 = vadd.f32 %v2860_v63, %v2848_v9 }
 0x46d   : > { %v2874_v12 = vadd.f32 %v2873_v7, %v2861_v11 }
 0x46e   : > { %v2836_v14 = vpop.f32.mrf.mxu3 }
 0x46f   : > { %v2930_v16 = vmax.f32 %v2874_v12, 0.0  ;;  %v2875_v17 = vpop.f32.mrf.mxu2 }
 0x471   : > { %v2936_v18 = vpack.c.bf16 %v2930_v16, %v2930_v16 }
 0x473   : > { %3386 = vmatmul.bf16.vlgmr.msrb.gmra.mxu3 %v2936_v18 }
 0x47a   : > { %v2899_v19 = vpop.f32.mrf.mxu0 }
 0x47b   : > { %v2912_v21 = vpop.f32.mrf.mxu1 }
 0x482   : > { %v2901_v30 = vpop.f32.mrf.mxu0 }
 0x483   : > { %v2914_v8 = vpop.f32.mrf.mxu1 }
 0x486   : > { %v2886_v24 = vpop.f32.mrf.mxu3 }
 0x487   : > { %v2887_v36 = vadd.f32 %v2886_v24, %v2257_v23  ;;  %v2925_v35 = vpop.f32.mrf.mxu2 }
 0x489   : > { %v2900_v25 = vadd.f32 %v2899_v19, %v2887_v36 }
 0x48b   : > { %v2913_v26 = vadd.f32 %v2912_v21, %v2900_v25 }
 0x48d   : > { %v2926_v27 = vadd.f32 %v2925_v35, %v2913_v26 }
 0x48e   : > { %v2888_v20 = vpop.f32.mrf.mxu3 }
 0x48f   : > { %v2931_v58 = vmax.f32 %v2926_v27, 0.0  ;;  %v2927_v29 = vpop.f32.mrf.mxu2 }
 0x491   : > { %v2937_v22 = vpack.c.bf16 %v2931_v58, %v2931_v58 }
 0x493   : > { %3399 = vmatmul.bf16.vlgmr.msra.gmra.mxu0 %v2937_v22 }
 0x4a0   : > { %v3348_v37 = vpop.f32.mrf.mxu0 }
 0x4a6   : > { %v3335_v32 = vpop.f32.mrf.mxu3 }
 0x4a7   : > { %v3336_v42 = vadd.f32 %v5215_v33, %v3335_v32 }
 0x4a8   : > { %v3350_v46 = vpop.f32.mrf.mxu0 }
 0x4a9   : > { %v3349_v34 = vadd.f32 %v3348_v37, %v3336_v42 }
 0x4ae   : > { %v3337_v38 = vpop.f32.mrf.mxu3 }
 0x4b0   : > { %v3361_v39 = vpop.f32.mrf.mxu1 }
 0x4b1   : > { %v3362_v40 = vadd.f32 %v3361_v39, %v3349_v34 }
 0x4b8   : > { %v3363_v41 = vpop.f32.mrf.mxu1 }
 0x4d6   : > { %v3374_v43 = vpop.f32.mrf.mxu2 }
 0x4d7   : > { %v3375_v48 = vadd.f32 %v3374_v43, %v3362_v40 }
 0x4de   : > { %v3376_v44 = vpop.f32.mrf.mxu2 }
 0x4f6   : > { %v3387_v45 = vpop.f32.mrf.mxu3 }
 0x4f7   : > { %v3388_v49 = vadd.f32 %v3387_v45, %v3375_v48 }
 0x4fe   : > { %v3389_v47 = vpop.f32.mrf.mxu3 }
 0x510   : > { %v3400_v50 = vpop.f32.mrf.mxu0 }
 0x511   : > { %v3401_v51 = vadd.f32 %v3400_v50, %v3388_v49 }
 0x513   : > { %3404 = vst [vmem:[%s502_s28] sm:$0xff] %v3401_v51 }
 0x518   : > { %v3402_v52 = vpop.f32.mrf.mxu0 }
 0x519 PF: > { %s5700_s15 = sld [smem:[#allocation12_spill]] }
 0x51f   : > { %s26_s25 = sadd.s32 1, %s5700_s15  }
 0x520   : > { %p23_p7 = scmp.ge.s32.totalorder %s26_s25, 4  }
 0x522   :  { %25 = sbr.rel (!%p23_p7) target bundleno = 7 (0x7), region = 121 }
 0x527   :  { %3424 = vsyncpa [#allocation3], 1 }
 0x528   :  { %3426 = vsyncpa [#allocation3 + $0x1], 1 }
 0x529   :  { %3427 = vsyncpa [#allocation5], 1 }
 0x52a   :  { %3428 = vsyncpa [#allocation8], 1 }

</bundles_post_ra>
